<compile_context>
chip_gen: v6e
topology: v6e:2x2x1
jax: 0.10.0
libtpu: 0.0.40
codegen_flags: <defaults>
</compile_context>

<pallas_src>
import functools

import jax
import jax.numpy as jnp
import numpy as np
from jax import lax
from jax.experimental import pallas as pl
from jax.experimental.pallas import tpu as pltpu


# ----------------------------- fused ConvSC kernel -----------------------------

def _convsc_kernel(patches_ref, w_comb_ref, b_comb_ref, gamma_ref, beta_ref,
                   w_cat_ref, b_cat_ref, o_ref, *, cout, cin, has_res,
                   center_row, hw, eps):
    """One ConvSC block for one batch element, fully fused.

    patches_ref : (1, Kdim, HW)  im2col'd input (channels-minor per tap)
    w_comb_ref  : (Ncomb, Kdim)  [conv_k ; conv_5 ; (res_3)] weights, kk-tap layout
    b_comb_ref  : (Ncomb, 1)
    gamma/beta  : (2*cout, 1)    GroupNorm affine of both branches
    w_cat_ref   : (cout, 2*cout) 1x1 cat conv
    b_cat_ref   : (cout, 1)
    o_ref       : (1, cout, HW)
    """
    patches = patches_ref[0]                                      # (Kdim, HW)

    # All three convs in one MXU matmul; output is lane-dense (HW on lanes).
    pre = jnp.dot(w_comb_ref[...], patches,
                  preferred_element_type=jnp.float32)
    pre = pre + b_comb_ref[...]                                   # (Ncomb, HW)

    # GroupNorm(2 groups) per branch + SiLU, fused epilogue.
    # Rows [0:cout] = branch1 (k x k), rows [cout:2*cout] = branch2 (5 x 5);
    # each branch's 2 groups are consecutive blocks of cg = cout // 2 rows.
    cg = cout // 2
    inv_n = 1.0 / float(cg * hw)
    parts = []
    for grp in range(4):
        blk = pre[grp * cg:(grp + 1) * cg]                        # (cg, HW)
        s1 = jnp.sum(blk, axis=-1, keepdims=True)                 # (cg, 1)
        m = jnp.sum(s1, axis=0, keepdims=True) * inv_n            # (1, 1)
        d = blk - m
        s2 = jnp.sum(d * d, axis=-1, keepdims=True)
        v = jnp.sum(s2, axis=0, keepdims=True) * inv_n            # (1, 1)
        parts.append(d * lax.rsqrt(v + eps))
    gn = jnp.concatenate(parts, axis=0)                           # (2*cout, HW)
    y = gn * gamma_ref[...] + beta_ref[...]
    y = y * jax.nn.sigmoid(y)                                     # SiLU

    # 1x1 cat conv + residual.
    out = jnp.dot(w_cat_ref[...], y, preferred_element_type=jnp.float32)
    out = out + b_cat_ref[...]
    if has_res:
        out = out + pre[2 * cout:]                                # 3x3 residual conv
    else:
        # Identity residual == centre tap of the patch tensor (cin == cout).
        out = out + patches[center_row:center_row + cin]
    o_ref[0] = out.astype(o_ref.dtype)


# ----------------------------- wrappers -----------------------------

def _circular_im2col_T(x, k):
    """NCHW circular pad + im2col, transposed: (B, k*k*C, H*W), row = tap*C + c."""
    B, C, H, W = x.shape
    p = k // 2
    xp = jnp.concatenate([x[:, :, -p:, :], x, x[:, :, :p, :]], axis=2)
    xp = jnp.concatenate([xp[:, :, :, -p:], xp, xp[:, :, :, :p]], axis=3)
    taps = [xp[:, :, dy:dy + H, dx:dx + W] for dy in range(k) for dx in range(k)]
    cols = jnp.stack(taps, axis=1)                                # (B, k*k, C, H, W)
    return cols.reshape(B, k * k * C, H * W)


def _embed_weight(w, kk):
    """Zero-embed a (cout, cin, k, k) kernel into the centred kk x kk tap layout."""
    cout, cin, k, _ = w.shape
    if k == kk:
        return w
    off = (kk - k) // 2
    out = jnp.zeros((cout, cin, kk, kk), w.dtype)
    return out.at[:, :, off:off + k, off:off + k].set(w)


def _to_mat_T(w_kk):
    """(cout, cin, kk, kk) -> (cout, kk*kk*cin) with column order [dy, dx, c]."""
    cout, cin, kk, _ = w_kk.shape
    return jnp.transpose(w_kk, (0, 2, 3, 1)).reshape(cout, kk * kk * cin)


def conv_sc_fused(x, p, spatio_kernel):
    """One ConvSC block: NCHW (B, C_in, H, W) -> (B, cout, H, W)."""
    B, C, H, W = x.shape
    HW = H * W
    kk = max(spatio_kernel, 5)
    cout = p["cat"]["b"].shape[0]
    has_res = p["res"] is not None

    patches = _circular_im2col_T(x, kk)                           # (B, Kdim, HW)
    Kdim = kk * kk * C

    w_list = [_to_mat_T(_embed_weight(p["conv"]["w"], kk)),
              _to_mat_T(_embed_weight(p["conv2"]["w"], kk))]
    b_list = [p["conv"]["b"], p["conv2"]["b"]]
    if has_res:
        w_list.append(_to_mat_T(_embed_weight(p["res"]["w"], kk)))
        b_list.append(p["res"]["b"])
    w_comb = jnp.concatenate(w_list, axis=0)                      # (Ncomb, Kdim)
    b_comb = jnp.concatenate(b_list, axis=0).reshape(-1, 1)
    Ncomb = 3 * cout if has_res else 2 * cout

    gamma = jnp.concatenate([p["conv"]["gn_w"], p["conv2"]["gn_w"]]).reshape(-1, 1)
    beta = jnp.concatenate([p["conv"]["gn_b"], p["conv2"]["gn_b"]]).reshape(-1, 1)
    w_cat = p["cat"]["w"]                                         # (cout, 2*cout)
    b_cat = p["cat"]["b"].reshape(-1, 1)

    center_row = ((kk // 2) * kk + (kk // 2)) * C

    flops = 2 * B * HW * (Ncomb * Kdim + 2 * cout * cout) + 12 * B * 2 * cout * HW
    transcendentals = B * 2 * cout * HW
    bytes_accessed = 4 * (B * Kdim * HW + Ncomb * Kdim + Ncomb + 4 * cout
                          + 2 * cout * cout + cout + B * cout * HW)

    kernel = functools.partial(_convsc_kernel, cout=cout, cin=C, has_res=has_res,
                               center_row=center_row, hw=HW, eps=1e-5)
    out = pl.pallas_call(
        kernel,
        out_shape=jax.ShapeDtypeStruct((B, cout, HW), jnp.float32),
        grid=(B,),
        in_specs=[
            pl.BlockSpec((1, Kdim, HW), lambda b: (b, 0, 0)),
            pl.BlockSpec((Ncomb, Kdim), lambda b: (0, 0)),
            pl.BlockSpec((Ncomb, 1), lambda b: (0, 0)),
            pl.BlockSpec((2 * cout, 1), lambda b: (0, 0)),
            pl.BlockSpec((2 * cout, 1), lambda b: (0, 0)),
            pl.BlockSpec((cout, 2 * cout), lambda b: (0, 0)),
            pl.BlockSpec((cout, 1), lambda b: (0, 0)),
        ],
        out_specs=pl.BlockSpec((1, cout, HW), lambda b: (b, 0, 0)),
        compiler_params=pltpu.CompilerParams(dimension_semantics=("parallel",)),
        cost_estimate=pl.CostEstimate(flops=flops,
                                      transcendentals=transcendentals,
                                      bytes_accessed=bytes_accessed),
    )(patches, w_comb, b_comb, gamma, beta, w_cat, b_cat)
    return out.reshape(B, cout, H, W)


def encoder_forward(x, params, spatio_kernel):
    """Encoder forward. x: NCHW. Stays NCHW throughout (lane axis = H*W)."""
    for p in params:
        x = conv_sc_fused(x, p, spatio_kernel)
    # TODO(synk): H==240/W==121 branch (bilinear F.interpolate + depthwise
    # pre_process0) is never taken at these shapes and is not implemented.
    return x


# ----------------------------- params -----------------------------

def _init_conv(key, cin, cout, k, std=0.02):
    w = std * jax.random.normal(key, (cout, cin, k, k), jnp.float32)
    b = jnp.zeros((cout,), jnp.float32)
    return {"w": w, "b": b}


def build_encoder_params(key, C_in, C_hid, N_S, spatio_kernel):
    chans = [C_in, (C_in + C_hid) // 2, C_hid] + [C_hid] * max(0, N_S - 2)
    params = []
    for i in range(N_S):
        cin, cout = chans[i], chans[i + 1]
        key, k0, k1, k2, k3 = jax.random.split(key, 5)
        layer = {
            "conv": {**_init_conv(k0, cin, cout, spatio_kernel),
                     "gn_w": jnp.ones((cout,), jnp.float32),
                     "gn_b": jnp.zeros((cout,), jnp.float32)},
            "conv2": {**_init_conv(k1, cin, cout, 5),
                      "gn_w": jnp.ones((cout,), jnp.float32),
                      "gn_b": jnp.zeros((cout,), jnp.float32)},
            "cat": {"w": 0.02 * jax.random.normal(k2, (cout, 2 * cout), jnp.float32),
                    "b": jnp.zeros((cout,), jnp.float32)},
            "res": _init_conv(k3, cin, cout, 3) if cin != cout else None,
        }
        params.append(layer)
    return params


# ----------------------------- pure-JAX reference -----------------------------

def _ref_conv(x, w, b):
    k = w.shape[-1]
    p = k // 2
    xp = jnp.pad(x, ((0, 0), (0, 0), (p, p), (p, p)), mode="wrap") if p else x
    y = lax.conv_general_dilated(xp, w, (1, 1), "VALID",
                                 dimension_numbers=("NCHW", "OIHW", "NCHW"))
    return y + b.reshape(1, -1, 1, 1)


def _ref_gn_silu(x, gamma, beta, G=2, eps=1e-5):
    B, C, H, W = x.shape
    xg = x.reshape(B, G, C // G, H, W)
    mean = xg.mean(axis=(2, 3, 4), keepdims=True)
    var = jnp.square(xg - mean).mean(axis=(2, 3, 4), keepdims=True)
    y = ((xg - mean) * lax.rsqrt(var + eps)).reshape(B, C, H, W)
    y = y * gamma.reshape(1, -1, 1, 1) + beta.reshape(1, -1, 1, 1)
    return y * jax.nn.sigmoid(y)


def encoder_reference(x, params, spatio_kernel):
    for p in params:
        y = _ref_gn_silu(_ref_conv(x, p["conv"]["w"], p["conv"]["b"]),
                         p["conv"]["gn_w"], p["conv"]["gn_b"])
        y2 = _ref_gn_silu(_ref_conv(x, p["conv2"]["w"], p["conv2"]["b"]),
                          p["conv2"]["gn_w"], p["conv2"]["gn_b"])
        cat = jnp.concatenate([y, y2], axis=1)
        cout = p["cat"]["b"].shape[0]
        w_cat = p["cat"]["w"].reshape(cout, 2 * cout, 1, 1)
        base = _ref_conv(cat, w_cat, p["cat"]["b"])
        res = _ref_conv(x, p["res"]["w"], p["res"]["b"]) if p["res"] is not None else x
        x = base + res
    return x


# ----------------------------- main -----------------------------

if __name__ == "__main__":
    B, C_in, C_hid, N_S, spatio_kernel = 2, 4, 8, 3, 3
    H, W = 16, 16

    key = jax.random.PRNGKey(0)
    kx, kp = jax.random.split(key)
    x = jax.random.normal(kx, (B, C_in, H, W), jnp.float32)       # PyTorch NCHW input
    params = build_encoder_params(kp, C_in, C_hid, N_S, spatio_kernel)

    fwd = jax.jit(functools.partial(encoder_forward, spatio_kernel=spatio_kernel))
    out = jax.block_until_ready(fwd(x, params))
    assert out.shape == (B, C_hid, H, W), out.shape

    ref = jax.block_until_ready(encoder_reference(x, params, spatio_kernel))
    np.testing.assert_allclose(np.asarray(out), np.asarray(ref), rtol=5e-3, atol=5e-3)

    print("KERNEL_OK")
</pallas_src>

<mosaic_0001>
module attributes {stable_mosaic.version = 11 : i64} {
  func.func @_convsc_kernel(%arg0: i32, %arg1: memref<1x100x256xf32, #tpu.memory_space<vmem>>, %arg2: memref<18x100xf32, #tpu.memory_space<vmem>>, %arg3: memref<18x1xf32, #tpu.memory_space<vmem>>, %arg4: memref<12x1xf32, #tpu.memory_space<vmem>>, %arg5: memref<12x1xf32, #tpu.memory_space<vmem>>, %arg6: memref<6x12xf32, #tpu.memory_space<vmem>>, %arg7: memref<6x1xf32, #tpu.memory_space<vmem>>, %arg8: memref<1x6x256xf32, #tpu.memory_space<vmem>>) attributes {dimension_semantics = [#tpu.dimension_semantics<parallel>], iteration_bounds = array<i64: 2>, scalar_prefetch = 0 : i64, scratch_operands = 0 : i64, tpu.core_type = #tpu.core_type<tc>, window_params = [{transform_indices = @transform_0, window_bounds = array<i64: 1, 100, 256>}, {pipeline_mode = #tpu.pipeline_mode<synchronous>, transform_indices = @transform_1, window_bounds = array<i64: 18, 100>}, {pipeline_mode = #tpu.pipeline_mode<synchronous>, transform_indices = @transform_2, window_bounds = array<i64: 18, 1>}, {pipeline_mode = #tpu.pipeline_mode<synchronous>, transform_indices = @transform_3, window_bounds = array<i64: 12, 1>}, {pipeline_mode = #tpu.pipeline_mode<synchronous>, transform_indices = @transform_4, window_bounds = array<i64: 12, 1>}, {pipeline_mode = #tpu.pipeline_mode<synchronous>, transform_indices = @transform_5, window_bounds = array<i64: 6, 12>}, {pipeline_mode = #tpu.pipeline_mode<synchronous>, transform_indices = @transform_6, window_bounds = array<i64: 6, 1>}, {transform_indices = @transform_7, window_bounds = array<i64: 1, 6, 256>}]} {
    %c0 = arith.constant 0 : index
    %c0_0 = arith.constant 0 : index
    %c0_1 = arith.constant 0 : index
    %0 = vector.load %arg1[%c0, %c0_0, %c0_1] : memref<1x100x256xf32, #tpu.memory_space<vmem>>, vector<1x100x256xf32>
    %1 = vector.shape_cast %0 : vector<1x100x256xf32> to vector<100x256xf32>
    %c0_2 = arith.constant 0 : index
    %c0_3 = arith.constant 0 : index
    %2 = vector.load %arg2[%c0_2, %c0_3] : memref<18x100xf32, #tpu.memory_space<vmem>>, vector<18x100xf32>
    %cst = arith.constant dense<0.000000e+00> : vector<18x256xf32>
    %3 = tpu.matmul %2, %1, %cst {dimension_numbers = #tpu.dot_dimension_numbers<[1], [0], [0], [1], [0, 0, 1, 1], [], []>} : vector<18x100xf32>, vector<100x256xf32>, vector<18x256xf32> -> vector<18x256xf32>
    %c0_4 = arith.constant 0 : index
    %c0_5 = arith.constant 0 : index
    %4 = vector.load %arg3[%c0_4, %c0_5] : memref<18x1xf32, #tpu.memory_space<vmem>>, vector<18x1xf32>
    %5 = vector.broadcast %4 : vector<18x1xf32> to vector<18x256xf32>
    %6 = arith.addf %3, %5 : vector<18x256xf32>
    %7 = vector.extract_strided_slice %6 {offsets = [0, 0], sizes = [3, 256], strides = [1, 1]} : vector<18x256xf32> to vector<3x256xf32>
    %cst_6 = arith.constant dense<0.000000e+00> : vector<3xf32>
    %8 = vector.multi_reduction <add>, %7, %cst_6 [1] : vector<3x256xf32> to vector<3xf32>
    %9 = vector.shape_cast %8 : vector<3xf32> to vector<3x1xf32>
    %cst_7 = arith.constant dense<0.000000e+00> : vector<1xf32>
    %10 = vector.multi_reduction <add>, %9, %cst_7 [0] : vector<3x1xf32> to vector<1xf32>
    %11 = vector.shape_cast %10 : vector<1xf32> to vector<1x1xf32>
    %cst_8 = arith.constant 0.00130208337 : f32
    %12 = vector.broadcast %cst_8 : f32 to vector<1x1xf32>
    %13 = arith.mulf %11, %12 : vector<1x1xf32>
    %14 = vector.broadcast %13 : vector<1x1xf32> to vector<3x256xf32>
    %15 = arith.subf %7, %14 : vector<3x256xf32>
    %16 = arith.mulf %15, %15 : vector<3x256xf32>
    %cst_9 = arith.constant dense<0.000000e+00> : vector<3xf32>
    %17 = vector.multi_reduction <add>, %16, %cst_9 [1] : vector<3x256xf32> to vector<3xf32>
    %18 = vector.shape_cast %17 : vector<3xf32> to vector<3x1xf32>
    %cst_10 = arith.constant dense<0.000000e+00> : vector<1xf32>
    %19 = vector.multi_reduction <add>, %18, %cst_10 [0] : vector<3x1xf32> to vector<1xf32>
    %20 = vector.shape_cast %19 : vector<1xf32> to vector<1x1xf32>
    %cst_11 = arith.constant 0.00130208337 : f32
    %21 = vector.broadcast %cst_11 : f32 to vector<1x1xf32>
    %22 = arith.mulf %20, %21 : vector<1x1xf32>
    %cst_12 = arith.constant 9.99999974E-6 : f32
    %23 = vector.broadcast %cst_12 : f32 to vector<1x1xf32>
    %24 = arith.addf %22, %23 : vector<1x1xf32>
    %25 = math.rsqrt %24 : vector<1x1xf32>
    %26 = vector.broadcast %25 : vector<1x1xf32> to vector<3x256xf32>
    %27 = arith.mulf %15, %26 : vector<3x256xf32>
    %28 = vector.extract_strided_slice %6 {offsets = [3, 0], sizes = [3, 256], strides = [1, 1]} : vector<18x256xf32> to vector<3x256xf32>
    %cst_13 = arith.constant dense<0.000000e+00> : vector<3xf32>
    %29 = vector.multi_reduction <add>, %28, %cst_13 [1] : vector<3x256xf32> to vector<3xf32>
    %30 = vector.shape_cast %29 : vector<3xf32> to vector<3x1xf32>
    %cst_14 = arith.constant dense<0.000000e+00> : vector<1xf32>
    %31 = vector.multi_reduction <add>, %30, %cst_14 [0] : vector<3x1xf32> to vector<1xf32>
    %32 = vector.shape_cast %31 : vector<1xf32> to vector<1x1xf32>
    %cst_15 = arith.constant 0.00130208337 : f32
    %33 = vector.broadcast %cst_15 : f32 to vector<1x1xf32>
    %34 = arith.mulf %32, %33 : vector<1x1xf32>
    %35 = vector.broadcast %34 : vector<1x1xf32> to vector<3x256xf32>
    %36 = arith.subf %28, %35 : vector<3x256xf32>
    %37 = arith.mulf %36, %36 : vector<3x256xf32>
    %cst_16 = arith.constant dense<0.000000e+00> : vector<3xf32>
    %38 = vector.multi_reduction <add>, %37, %cst_16 [1] : vector<3x256xf32> to vector<3xf32>
    %39 = vector.shape_cast %38 : vector<3xf32> to vector<3x1xf32>
    %cst_17 = arith.constant dense<0.000000e+00> : vector<1xf32>
    %40 = vector.multi_reduction <add>, %39, %cst_17 [0] : vector<3x1xf32> to vector<1xf32>
    %41 = vector.shape_cast %40 : vector<1xf32> to vector<1x1xf32>
    %cst_18 = arith.constant 0.00130208337 : f32
    %42 = vector.broadcast %cst_18 : f32 to vector<1x1xf32>
    %43 = arith.mulf %41, %42 : vector<1x1xf32>
    %cst_19 = arith.constant 9.99999974E-6 : f32
    %44 = vector.broadcast %cst_19 : f32 to vector<1x1xf32>
    %45 = arith.addf %43, %44 : vector<1x1xf32>
    %46 = math.rsqrt %45 : vector<1x1xf32>
    %47 = vector.broadcast %46 : vector<1x1xf32> to vector<3x256xf32>
    %48 = arith.mulf %36, %47 : vector<3x256xf32>
    %49 = vector.extract_strided_slice %6 {offsets = [6, 0], sizes = [3, 256], strides = [1, 1]} : vector<18x256xf32> to vector<3x256xf32>
    %cst_20 = arith.constant dense<0.000000e+00> : vector<3xf32>
    %50 = vector.multi_reduction <add>, %49, %cst_20 [1] : vector<3x256xf32> to vector<3xf32>
    %51 = vector.shape_cast %50 : vector<3xf32> to vector<3x1xf32>
    %cst_21 = arith.constant dense<0.000000e+00> : vector<1xf32>
    %52 = vector.multi_reduction <add>, %51, %cst_21 [0] : vector<3x1xf32> to vector<1xf32>
    %53 = vector.shape_cast %52 : vector<1xf32> to vector<1x1xf32>
    %cst_22 = arith.constant 0.00130208337 : f32
    %54 = vector.broadcast %cst_22 : f32 to vector<1x1xf32>
    %55 = arith.mulf %53, %54 : vector<1x1xf32>
    %56 = vector.broadcast %55 : vector<1x1xf32> to vector<3x256xf32>
    %57 = arith.subf %49, %56 : vector<3x256xf32>
    %58 = arith.mulf %57, %57 : vector<3x256xf32>
    %cst_23 = arith.constant dense<0.000000e+00> : vector<3xf32>
    %59 = vector.multi_reduction <add>, %58, %cst_23 [1] : vector<3x256xf32> to vector<3xf32>
    %60 = vector.shape_cast %59 : vector<3xf32> to vector<3x1xf32>
    %cst_24 = arith.constant dense<0.000000e+00> : vector<1xf32>
    %61 = vector.multi_reduction <add>, %60, %cst_24 [0] : vector<3x1xf32> to vector<1xf32>
    %62 = vector.shape_cast %61 : vector<1xf32> to vector<1x1xf32>
    %cst_25 = arith.constant 0.00130208337 : f32
    %63 = vector.broadcast %cst_25 : f32 to vector<1x1xf32>
    %64 = arith.mulf %62, %63 : vector<1x1xf32>
    %cst_26 = arith.constant 9.99999974E-6 : f32
    %65 = vector.broadcast %cst_26 : f32 to vector<1x1xf32>
    %66 = arith.addf %64, %65 : vector<1x1xf32>
    %67 = math.rsqrt %66 : vector<1x1xf32>
    %68 = vector.broadcast %67 : vector<1x1xf32> to vector<3x256xf32>
    %69 = arith.mulf %57, %68 : vector<3x256xf32>
    %70 = vector.extract_strided_slice %6 {offsets = [9, 0], sizes = [3, 256], strides = [1, 1]} : vector<18x256xf32> to vector<3x256xf32>
    %cst_27 = arith.constant dense<0.000000e+00> : vector<3xf32>
    %71 = vector.multi_reduction <add>, %70, %cst_27 [1] : vector<3x256xf32> to vector<3xf32>
    %72 = vector.shape_cast %71 : vector<3xf32> to vector<3x1xf32>
    %cst_28 = arith.constant dense<0.000000e+00> : vector<1xf32>
    %73 = vector.multi_reduction <add>, %72, %cst_28 [0] : vector<3x1xf32> to vector<1xf32>
    %74 = vector.shape_cast %73 : vector<1xf32> to vector<1x1xf32>
    %cst_29 = arith.constant 0.00130208337 : f32
    %75 = vector.broadcast %cst_29 : f32 to vector<1x1xf32>
    %76 = arith.mulf %74, %75 : vector<1x1xf32>
    %77 = vector.broadcast %76 : vector<1x1xf32> to vector<3x256xf32>
    %78 = arith.subf %70, %77 : vector<3x256xf32>
    %79 = arith.mulf %78, %78 : vector<3x256xf32>
    %cst_30 = arith.constant dense<0.000000e+00> : vector<3xf32>
    %80 = vector.multi_reduction <add>, %79, %cst_30 [1] : vector<3x256xf32> to vector<3xf32>
    %81 = vector.shape_cast %80 : vector<3xf32> to vector<3x1xf32>
    %cst_31 = arith.constant dense<0.000000e+00> : vector<1xf32>
    %82 = vector.multi_reduction <add>, %81, %cst_31 [0] : vector<3x1xf32> to vector<1xf32>
    %83 = vector.shape_cast %82 : vector<1xf32> to vector<1x1xf32>
    %cst_32 = arith.constant 0.00130208337 : f32
    %84 = vector.broadcast %cst_32 : f32 to vector<1x1xf32>
    %85 = arith.mulf %83, %84 : vector<1x1xf32>
    %cst_33 = arith.constant 9.99999974E-6 : f32
    %86 = vector.broadcast %cst_33 : f32 to vector<1x1xf32>
    %87 = arith.addf %85, %86 : vector<1x1xf32>
    %88 = math.rsqrt %87 : vector<1x1xf32>
    %89 = vector.broadcast %88 : vector<1x1xf32> to vector<3x256xf32>
    %90 = arith.mulf %78, %89 : vector<3x256xf32>
    %91 = tpu.concatenate %27, %48, %69, %90 in 0 : vector<3x256xf32>, vector<3x256xf32>, vector<3x256xf32>, vector<3x256xf32> -> vector<12x256xf32>
    %c0_34 = arith.constant 0 : index
    %c0_35 = arith.constant 0 : index
    %92 = vector.load %arg4[%c0_34, %c0_35] : memref<12x1xf32, #tpu.memory_space<vmem>>, vector<12x1xf32>
    %93 = vector.broadcast %92 : vector<12x1xf32> to vector<12x256xf32>
    %94 = arith.mulf %91, %93 : vector<12x256xf32>
    %c0_36 = arith.constant 0 : index
    %c0_37 = arith.constant 0 : index
    %95 = vector.load %arg5[%c0_36, %c0_37] : memref<12x1xf32, #tpu.memory_space<vmem>>, vector<12x1xf32>
    %96 = vector.broadcast %95 : vector<12x1xf32> to vector<12x256xf32>
    %97 = arith.addf %94, %96 : vector<12x256xf32>
    %98 = arith.negf %97 : vector<12x256xf32>
    %99 = math.exp %98 : vector<12x256xf32>
    %cst_38 = arith.constant 1.000000e+00 : f32
    %100 = vector.broadcast %cst_38 : f32 to vector<12x256xf32>
    %101 = arith.addf %100, %99 : vector<12x256xf32>
    %102 = arith.divf %100, %101 : vector<12x256xf32>
    %103 = arith.mulf %97, %102 : vector<12x256xf32>
    %c0_39 = arith.constant 0 : index
    %c0_40 = arith.constant 0 : index
    %104 = vector.load %arg6[%c0_39, %c0_40] : memref<6x12xf32, #tpu.memory_space<vmem>>, vector<6x12xf32>
    %cst_41 = arith.constant dense<0.000000e+00> : vector<6x256xf32>
    %105 = tpu.matmul %104, %103, %cst_41 {dimension_numbers = #tpu.dot_dimension_numbers<[1], [0], [0], [1], [0, 0, 1, 1], [], []>} : vector<6x12xf32>, vector<12x256xf32>, vector<6x256xf32> -> vector<6x256xf32>
    %c0_42 = arith.constant 0 : index
    %c0_43 = arith.constant 0 : index
    %106 = vector.load %arg7[%c0_42, %c0_43] : memref<6x1xf32, #tpu.memory_space<vmem>>, vector<6x1xf32>
    %107 = vector.broadcast %106 : vector<6x1xf32> to vector<6x256xf32>
    %108 = arith.addf %105, %107 : vector<6x256xf32>
    %109 = vector.extract_strided_slice %6 {offsets = [12, 0], sizes = [6, 256], strides = [1, 1]} : vector<18x256xf32> to vector<6x256xf32>
    %110 = arith.addf %108, %109 : vector<6x256xf32>
    %c0_44 = arith.constant 0 : index
    %c0_45 = arith.constant 0 : index
    %c0_46 = arith.constant 0 : index
    %111 = vector.load %arg8[%c0_44, %c0_45, %c0_46] : memref<1x6x256xf32, #tpu.memory_space<vmem>>, vector<1x6x256xf32>
    %112 = vector.shape_cast %111 : vector<1x6x256xf32> to vector<6x256xf32>
    %113 = vector.shape_cast %110 : vector<6x256xf32> to vector<1x6x256xf32>
    tpu.vector_store %arg8[%c0_44, %c0_45, %c0_46], %113 {strides = array<i32>} : memref<1x6x256xf32, #tpu.memory_space<vmem>>, vector<1x6x256xf32>,
    return
  }
  func.func @transform_0(%arg0: i32) -> (i32, i32, i32) {
    %c0_i32 = arith.constant 0 : i32
    %c0_i32_0 = arith.constant 0 : i32
    %c0_i32_1 = arith.constant 0 : i32
    return %arg0, %c0_i32, %c0_i32_0 : i32, i32, i32
  }
  func.func @transform_1(%arg0: i32) -> (i32, i32) {
    %c0_i32 = arith.constant 0 : i32
    %c0_i32_0 = arith.constant 0 : i32
    %c0_i32_1 = arith.constant 0 : i32
    return %c0_i32, %c0_i32_0 : i32, i32
  }
  func.func @transform_2(%arg0: i32) -> (i32, i32) {
    %c0_i32 = arith.constant 0 : i32
    %c0_i32_0 = arith.constant 0 : i32
    %c0_i32_1 = arith.constant 0 : i32
    return %c0_i32, %c0_i32_0 : i32, i32
  }
  func.func @transform_3(%arg0: i32) -> (i32, i32) {
    %c0_i32 = arith.constant 0 : i32
    %c0_i32_0 = arith.constant 0 : i32
    %c0_i32_1 = arith.constant 0 : i32
    return %c0_i32, %c0_i32_0 : i32, i32
  }
  func.func @transform_4(%arg0: i32) -> (i32, i32) {
    %c0_i32 = arith.constant 0 : i32
    %c0_i32_0 = arith.constant 0 : i32
    %c0_i32_1 = arith.constant 0 : i32
    return %c0_i32, %c0_i32_0 : i32, i32
  }
  func.func @transform_5(%arg0: i32) -> (i32, i32) {
    %c0_i32 = arith.constant 0 : i32
    %c0_i32_0 = arith.constant 0 : i32
    %c0_i32_1 = arith.constant 0 : i32
    return %c0_i32, %c0_i32_0 : i32, i32
  }
  func.func @transform_6(%arg0: i32) -> (i32, i32) {
    %c0_i32 = arith.constant 0 : i32
    %c0_i32_0 = arith.constant 0 : i32
    %c0_i32_1 = arith.constant 0 : i32
    return %c0_i32, %c0_i32_0 : i32, i32
  }
  func.func @transform_7(%arg0: i32) -> (i32, i32, i32) {
    %c0_i32 = arith.constant 0 : i32
    %c0_i32_0 = arith.constant 0 : i32
    %c0_i32_1 = arith.constant 0 : i32
    return %arg0, %c0_i32, %c0_i32_0 : i32, i32, i32
  }
}

module attributes {stable_mosaic.version = 11 : i64} {
  func.func @_convsc_kernel(%arg0: i32, %arg1: memref<1x150x256xf32, #tpu.memory_space<vmem>>, %arg2: memref<24x150xf32, #tpu.memory_space<vmem>>, %arg3: memref<24x1xf32, #tpu.memory_space<vmem>>, %arg4: memref<16x1xf32, #tpu.memory_space<vmem>>, %arg5: memref<16x1xf32, #tpu.memory_space<vmem>>, %arg6: memref<8x16xf32, #tpu.memory_space<vmem>>, %arg7: memref<8x1xf32, #tpu.memory_space<vmem>>, %arg8: memref<1x8x256xf32, #tpu.memory_space<vmem>>) attributes {dimension_semantics = [#tpu.dimension_semantics<parallel>], iteration_bounds = array<i64: 2>, scalar_prefetch = 0 : i64, scratch_operands = 0 : i64, tpu.core_type = #tpu.core_type<tc>, window_params = [{transform_indices = @transform_0, window_bounds = array<i64: 1, 150, 256>}, {pipeline_mode = #tpu.pipeline_mode<synchronous>, transform_indices = @transform_1, window_bounds = array<i64: 24, 150>}, {pipeline_mode = #tpu.pipeline_mode<synchronous>, transform_indices = @transform_2, window_bounds = array<i64: 24, 1>}, {pipeline_mode = #tpu.pipeline_mode<synchronous>, transform_indices = @transform_3, window_bounds = array<i64: 16, 1>}, {pipeline_mode = #tpu.pipeline_mode<synchronous>, transform_indices = @transform_4, window_bounds = array<i64: 16, 1>}, {pipeline_mode = #tpu.pipeline_mode<synchronous>, transform_indices = @transform_5, window_bounds = array<i64: 8, 16>}, {pipeline_mode = #tpu.pipeline_mode<synchronous>, transform_indices = @transform_6, window_bounds = array<i64: 8, 1>}, {transform_indices = @transform_7, window_bounds = array<i64: 1, 8, 256>}]} {
    %c0 = arith.constant 0 : index
    %c0_0 = arith.constant 0 : index
    %c0_1 = arith.constant 0 : index
    %0 = vector.load %arg1[%c0, %c0_0, %c0_1] : memref<1x150x256xf32, #tpu.memory_space<vmem>>, vector<1x150x256xf32>
    %1 = vector.shape_cast %0 : vector<1x150x256xf32> to vector<150x256xf32>
    %c0_2 = arith.constant 0 : index
    %c0_3 = arith.constant 0 : index
    %2 = vector.load %arg2[%c0_2, %c0_3] : memref<24x150xf32, #tpu.memory_space<vmem>>, vector<24x150xf32>
    %cst = arith.constant dense<0.000000e+00> : vector<24x256xf32>
    %3 = tpu.matmul %2, %1, %cst {dimension_numbers = #tpu.dot_dimension_numbers<[1], [0], [0], [1], [0, 0, 1, 1], [], []>} : vector<24x150xf32>, vector<150x256xf32>, vector<24x256xf32> -> vector<24x256xf32>
    %c0_4 = arith.constant 0 : index
    %c0_5 = arith.constant 0 : index
    %4 = vector.load %arg3[%c0_4, %c0_5] : memref<24x1xf32, #tpu.memory_space<vmem>>, vector<24x1xf32>
    %5 = vector.broadcast %4 : vector<24x1xf32> to vector<24x256xf32>
    %6 = arith.addf %3, %5 : vector<24x256xf32>
    %7 = vector.extract_strided_slice %6 {offsets = [0, 0], sizes = [4, 256], strides = [1, 1]} : vector<24x256xf32> to vector<4x256xf32>
    %cst_6 = arith.constant dense<0.000000e+00> : vector<4xf32>
    %8 = vector.multi_reduction <add>, %7, %cst_6 [1] : vector<4x256xf32> to vector<4xf32>
    %9 = vector.shape_cast %8 : vector<4xf32> to vector<4x1xf32>
    %cst_7 = arith.constant dense<0.000000e+00> : vector<1xf32>
    %10 = vector.multi_reduction <add>, %9, %cst_7 [0] : vector<4x1xf32> to vector<1xf32>
    %11 = vector.shape_cast %10 : vector<1xf32> to vector<1x1xf32>
    %cst_8 = arith.constant 9.765625E-4 : f32
    %12 = vector.broadcast %cst_8 : f32 to vector<1x1xf32>
    %13 = arith.mulf %11, %12 : vector<1x1xf32>
    %14 = vector.broadcast %13 : vector<1x1xf32> to vector<4x256xf32>
    %15 = arith.subf %7, %14 : vector<4x256xf32>
    %16 = arith.mulf %15, %15 : vector<4x256xf32>
    %cst_9 = arith.constant dense<0.000000e+00> : vector<4xf32>
    %17 = vector.multi_reduction <add>, %16, %cst_9 [1] : vector<4x256xf32> to vector<4xf32>
    %18 = vector.shape_cast %17 : vector<4xf32> to vector<4x1xf32>
    %cst_10 = arith.constant dense<0.000000e+00> : vector<1xf32>
    %19 = vector.multi_reduction <add>, %18, %cst_10 [0] : vector<4x1xf32> to vector<1xf32>
    %20 = vector.shape_cast %19 : vector<1xf32> to vector<1x1xf32>
    %cst_11 = arith.constant 9.765625E-4 : f32
    %21 = vector.broadcast %cst_11 : f32 to vector<1x1xf32>
    %22 = arith.mulf %20, %21 : vector<1x1xf32>
    %cst_12 = arith.constant 9.99999974E-6 : f32
    %23 = vector.broadcast %cst_12 : f32 to vector<1x1xf32>
    %24 = arith.addf %22, %23 : vector<1x1xf32>
    %25 = math.rsqrt %24 : vector<1x1xf32>
    %26 = vector.broadcast %25 : vector<1x1xf32> to vector<4x256xf32>
    %27 = arith.mulf %15, %26 : vector<4x256xf32>
    %28 = vector.extract_strided_slice %6 {offsets = [4, 0], sizes = [4, 256], strides = [1, 1]} : vector<24x256xf32> to vector<4x256xf32>
    %cst_13 = arith.constant dense<0.000000e+00> : vector<4xf32>
    %29 = vector.multi_reduction <add>, %28, %cst_13 [1] : vector<4x256xf32> to vector<4xf32>
    %30 = vector.shape_cast %29 : vector<4xf32> to vector<4x1xf32>
    %cst_14 = arith.constant dense<0.000000e+00> : vector<1xf32>
    %31 = vector.multi_reduction <add>, %30, %cst_14 [0] : vector<4x1xf32> to vector<1xf32>
    %32 = vector.shape_cast %31 : vector<1xf32> to vector<1x1xf32>
    %cst_15 = arith.constant 9.765625E-4 : f32
    %33 = vector.broadcast %cst_15 : f32 to vector<1x1xf32>
    %34 = arith.mulf %32, %33 : vector<1x1xf32>
    %35 = vector.broadcast %34 : vector<1x1xf32> to vector<4x256xf32>
    %36 = arith.subf %28, %35 : vector<4x256xf32>
    %37 = arith.mulf %36, %36 : vector<4x256xf32>
    %cst_16 = arith.constant dense<0.000000e+00> : vector<4xf32>
    %38 = vector.multi_reduction <add>, %37, %cst_16 [1] : vector<4x256xf32> to vector<4xf32>
    %39 = vector.shape_cast %38 : vector<4xf32> to vector<4x1xf32>
    %cst_17 = arith.constant dense<0.000000e+00> : vector<1xf32>
    %40 = vector.multi_reduction <add>, %39, %cst_17 [0] : vector<4x1xf32> to vector<1xf32>
    %41 = vector.shape_cast %40 : vector<1xf32> to vector<1x1xf32>
    %cst_18 = arith.constant 9.765625E-4 : f32
    %42 = vector.broadcast %cst_18 : f32 to vector<1x1xf32>
    %43 = arith.mulf %41, %42 : vector<1x1xf32>
    %cst_19 = arith.constant 9.99999974E-6 : f32
    %44 = vector.broadcast %cst_19 : f32 to vector<1x1xf32>
    %45 = arith.addf %43, %44 : vector<1x1xf32>
    %46 = math.rsqrt %45 : vector<1x1xf32>
    %47 = vector.broadcast %46 : vector<1x1xf32> to vector<4x256xf32>
    %48 = arith.mulf %36, %47 : vector<4x256xf32>
    %49 = vector.extract_strided_slice %6 {offsets = [8, 0], sizes = [4, 256], strides = [1, 1]} : vector<24x256xf32> to vector<4x256xf32>
    %cst_20 = arith.constant dense<0.000000e+00> : vector<4xf32>
    %50 = vector.multi_reduction <add>, %49, %cst_20 [1] : vector<4x256xf32> to vector<4xf32>
    %51 = vector.shape_cast %50 : vector<4xf32> to vector<4x1xf32>
    %cst_21 = arith.constant dense<0.000000e+00> : vector<1xf32>
    %52 = vector.multi_reduction <add>, %51, %cst_21 [0] : vector<4x1xf32> to vector<1xf32>
    %53 = vector.shape_cast %52 : vector<1xf32> to vector<1x1xf32>
    %cst_22 = arith.constant 9.765625E-4 : f32
    %54 = vector.broadcast %cst_22 : f32 to vector<1x1xf32>
    %55 = arith.mulf %53, %54 : vector<1x1xf32>
    %56 = vector.broadcast %55 : vector<1x1xf32> to vector<4x256xf32>
    %57 = arith.subf %49, %56 : vector<4x256xf32>
    %58 = arith.mulf %57, %57 : vector<4x256xf32>
    %cst_23 = arith.constant dense<0.000000e+00> : vector<4xf32>
    %59 = vector.multi_reduction <add>, %58, %cst_23 [1] : vector<4x256xf32> to vector<4xf32>
    %60 = vector.shape_cast %59 : vector<4xf32> to vector<4x1xf32>
    %cst_24 = arith.constant dense<0.000000e+00> : vector<1xf32>
    %61 = vector.multi_reduction <add>, %60, %cst_24 [0] : vector<4x1xf32> to vector<1xf32>
    %62 = vector.shape_cast %61 : vector<1xf32> to vector<1x1xf32>
    %cst_25 = arith.constant 9.765625E-4 : f32
    %63 = vector.broadcast %cst_25 : f32 to vector<1x1xf32>
    %64 = arith.mulf %62, %63 : vector<1x1xf32>
    %cst_26 = arith.constant 9.99999974E-6 : f32
    %65 = vector.broadcast %cst_26 : f32 to vector<1x1xf32>
    %66 = arith.addf %64, %65 : vector<1x1xf32>
    %67 = math.rsqrt %66 : vector<1x1xf32>
    %68 = vector.broadcast %67 : vector<1x1xf32> to vector<4x256xf32>
    %69 = arith.mulf %57, %68 : vector<4x256xf32>
    %70 = vector.extract_strided_slice %6 {offsets = [12, 0], sizes = [4, 256], strides = [1, 1]} : vector<24x256xf32> to vector<4x256xf32>
    %cst_27 = arith.constant dense<0.000000e+00> : vector<4xf32>
    %71 = vector.multi_reduction <add>, %70, %cst_27 [1] : vector<4x256xf32> to vector<4xf32>
    %72 = vector.shape_cast %71 : vector<4xf32> to vector<4x1xf32>
    %cst_28 = arith.constant dense<0.000000e+00> : vector<1xf32>
    %73 = vector.multi_reduction <add>, %72, %cst_28 [0] : vector<4x1xf32> to vector<1xf32>
    %74 = vector.shape_cast %73 : vector<1xf32> to vector<1x1xf32>
    %cst_29 = arith.constant 9.765625E-4 : f32
    %75 = vector.broadcast %cst_29 : f32 to vector<1x1xf32>
    %76 = arith.mulf %74, %75 : vector<1x1xf32>
    %77 = vector.broadcast %76 : vector<1x1xf32> to vector<4x256xf32>
    %78 = arith.subf %70, %77 : vector<4x256xf32>
    %79 = arith.mulf %78, %78 : vector<4x256xf32>
    %cst_30 = arith.constant dense<0.000000e+00> : vector<4xf32>
    %80 = vector.multi_reduction <add>, %79, %cst_30 [1] : vector<4x256xf32> to vector<4xf32>
    %81 = vector.shape_cast %80 : vector<4xf32> to vector<4x1xf32>
    %cst_31 = arith.constant dense<0.000000e+00> : vector<1xf32>
    %82 = vector.multi_reduction <add>, %81, %cst_31 [0] : vector<4x1xf32> to vector<1xf32>
    %83 = vector.shape_cast %82 : vector<1xf32> to vector<1x1xf32>
    %cst_32 = arith.constant 9.765625E-4 : f32
    %84 = vector.broadcast %cst_32 : f32 to vector<1x1xf32>
    %85 = arith.mulf %83, %84 : vector<1x1xf32>
    %cst_33 = arith.constant 9.99999974E-6 : f32
    %86 = vector.broadcast %cst_33 : f32 to vector<1x1xf32>
    %87 = arith.addf %85, %86 : vector<1x1xf32>
    %88 = math.rsqrt %87 : vector<1x1xf32>
    %89 = vector.broadcast %88 : vector<1x1xf32> to vector<4x256xf32>
    %90 = arith.mulf %78, %89 : vector<4x256xf32>
    %91 = tpu.concatenate %27, %48, %69, %90 in 0 : vector<4x256xf32>, vector<4x256xf32>, vector<4x256xf32>, vector<4x256xf32> -> vector<16x256xf32>
    %c0_34 = arith.constant 0 : index
    %c0_35 = arith.constant 0 : index
    %92 = vector.load %arg4[%c0_34, %c0_35] : memref<16x1xf32, #tpu.memory_space<vmem>>, vector<16x1xf32>
    %93 = vector.broadcast %92 : vector<16x1xf32> to vector<16x256xf32>
    %94 = arith.mulf %91, %93 : vector<16x256xf32>
    %c0_36 = arith.constant 0 : index
    %c0_37 = arith.constant 0 : index
    %95 = vector.load %arg5[%c0_36, %c0_37] : memref<16x1xf32, #tpu.memory_space<vmem>>, vector<16x1xf32>
    %96 = vector.broadcast %95 : vector<16x1xf32> to vector<16x256xf32>
    %97 = arith.addf %94, %96 : vector<16x256xf32>
    %98 = arith.negf %97 : vector<16x256xf32>
    %99 = math.exp %98 : vector<16x256xf32>
    %cst_38 = arith.constant 1.000000e+00 : f32
    %100 = vector.broadcast %cst_38 : f32 to vector<16x256xf32>
    %101 = arith.addf %100, %99 : vector<16x256xf32>
    %102 = arith.divf %100, %101 : vector<16x256xf32>
    %103 = arith.mulf %97, %102 : vector<16x256xf32>
    %c0_39 = arith.constant 0 : index
    %c0_40 = arith.constant 0 : index
    %104 = vector.load %arg6[%c0_39, %c0_40] : memref<8x16xf32, #tpu.memory_space<vmem>>, vector<8x16xf32>
    %cst_41 = arith.constant dense<0.000000e+00> : vector<8x256xf32>
    %105 = tpu.matmul %104, %103, %cst_41 {dimension_numbers = #tpu.dot_dimension_numbers<[1], [0], [0], [1], [0, 0, 1, 1], [], []>} : vector<8x16xf32>, vector<16x256xf32>, vector<8x256xf32> -> vector<8x256xf32>
    %c0_42 = arith.constant 0 : index
    %c0_43 = arith.constant 0 : index
    %106 = vector.load %arg7[%c0_42, %c0_43] : memref<8x1xf32, #tpu.memory_space<vmem>>, vector<8x1xf32>
    %107 = vector.broadcast %106 : vector<8x1xf32> to vector<8x256xf32>
    %108 = arith.addf %105, %107 : vector<8x256xf32>
    %109 = vector.extract_strided_slice %6 {offsets = [16, 0], sizes = [8, 256], strides = [1, 1]} : vector<24x256xf32> to vector<8x256xf32>
    %110 = arith.addf %108, %109 : vector<8x256xf32>
    %c0_44 = arith.constant 0 : index
    %c0_45 = arith.constant 0 : index
    %c0_46 = arith.constant 0 : index
    %111 = vector.load %arg8[%c0_44, %c0_45, %c0_46] : memref<1x8x256xf32, #tpu.memory_space<vmem>>, vector<1x8x256xf32>
    %112 = vector.shape_cast %111 : vector<1x8x256xf32> to vector<8x256xf32>
    %113 = vector.shape_cast %110 : vector<8x256xf32> to vector<1x8x256xf32>
    tpu.vector_store %arg8[%c0_44, %c0_45, %c0_46], %113 {strides = array<i32>} : memref<1x8x256xf32, #tpu.memory_space<vmem>>, vector<1x8x256xf32>,
    return
  }
  func.func @transform_0(%arg0: i32) -> (i32, i32, i32) {
    %c0_i32 = arith.constant 0 : i32
    %c0_i32_0 = arith.constant 0 : i32
    %c0_i32_1 = arith.constant 0 : i32
    return %arg0, %c0_i32, %c0_i32_0 : i32, i32, i32
  }
  func.func @transform_1(%arg0: i32) -> (i32, i32) {
    %c0_i32 = arith.constant 0 : i32
    %c0_i32_0 = arith.constant 0 : i32
    %c0_i32_1 = arith.constant 0 : i32
    return %c0_i32, %c0_i32_0 : i32, i32
  }
  func.func @transform_2(%arg0: i32) -> (i32, i32) {
    %c0_i32 = arith.constant 0 : i32
    %c0_i32_0 = arith.constant 0 : i32
    %c0_i32_1 = arith.constant 0 : i32
    return %c0_i32, %c0_i32_0 : i32, i32
  }
  func.func @transform_3(%arg0: i32) -> (i32, i32) {
    %c0_i32 = arith.constant 0 : i32
    %c0_i32_0 = arith.constant 0 : i32
    %c0_i32_1 = arith.constant 0 : i32
    return %c0_i32, %c0_i32_0 : i32, i32
  }
  func.func @transform_4(%arg0: i32) -> (i32, i32) {
    %c0_i32 = arith.constant 0 : i32
    %c0_i32_0 = arith.constant 0 : i32
    %c0_i32_1 = arith.constant 0 : i32
    return %c0_i32, %c0_i32_0 : i32, i32
  }
  func.func @transform_5(%arg0: i32) -> (i32, i32) {
    %c0_i32 = arith.constant 0 : i32
    %c0_i32_0 = arith.constant 0 : i32
    %c0_i32_1 = arith.constant 0 : i32
    return %c0_i32, %c0_i32_0 : i32, i32
  }
  func.func @transform_6(%arg0: i32) -> (i32, i32) {
    %c0_i32 = arith.constant 0 : i32
    %c0_i32_0 = arith.constant 0 : i32
    %c0_i32_1 = arith.constant 0 : i32
    return %c0_i32, %c0_i32_0 : i32, i32
  }
  func.func @transform_7(%arg0: i32) -> (i32, i32, i32) {
    %c0_i32 = arith.constant 0 : i32
    %c0_i32_0 = arith.constant 0 : i32
    %c0_i32_1 = arith.constant 0 : i32
    return %arg0, %c0_i32, %c0_i32_0 : i32, i32, i32
  }
}

module attributes {stable_mosaic.version = 11 : i64} {
  func.func @_convsc_kernel(%arg0: i32, %arg1: memref<1x200x256xf32, #tpu.memory_space<vmem>>, %arg2: memref<16x200xf32, #tpu.memory_space<vmem>>, %arg3: memref<16x1xf32, #tpu.memory_space<vmem>>, %arg4: memref<16x1xf32, #tpu.memory_space<vmem>>, %arg5: memref<16x1xf32, #tpu.memory_space<vmem>>, %arg6: memref<8x16xf32, #tpu.memory_space<vmem>>, %arg7: memref<8x1xf32, #tpu.memory_space<vmem>>, %arg8: memref<1x8x256xf32, #tpu.memory_space<vmem>>) attributes {dimension_semantics = [#tpu.dimension_semantics<parallel>], iteration_bounds = array<i64: 2>, scalar_prefetch = 0 : i64, scratch_operands = 0 : i64, tpu.core_type = #tpu.core_type<tc>, window_params = [{transform_indices = @transform_0, window_bounds = array<i64: 1, 200, 256>}, {pipeline_mode = #tpu.pipeline_mode<synchronous>, transform_indices = @transform_1, window_bounds = array<i64: 16, 200>}, {pipeline_mode = #tpu.pipeline_mode<synchronous>, transform_indices = @transform_2, window_bounds = array<i64: 16, 1>}, {pipeline_mode = #tpu.pipeline_mode<synchronous>, transform_indices = @transform_3, window_bounds = array<i64: 16, 1>}, {pipeline_mode = #tpu.pipeline_mode<synchronous>, transform_indices = @transform_4, window_bounds = array<i64: 16, 1>}, {pipeline_mode = #tpu.pipeline_mode<synchronous>, transform_indices = @transform_5, window_bounds = array<i64: 8, 16>}, {pipeline_mode = #tpu.pipeline_mode<synchronous>, transform_indices = @transform_6, window_bounds = array<i64: 8, 1>}, {transform_indices = @transform_7, window_bounds = array<i64: 1, 8, 256>}]} {
    %c0 = arith.constant 0 : index
    %c0_0 = arith.constant 0 : index
    %c0_1 = arith.constant 0 : index
    %0 = vector.load %arg1[%c0, %c0_0, %c0_1] : memref<1x200x256xf32, #tpu.memory_space<vmem>>, vector<1x200x256xf32>
    %1 = vector.shape_cast %0 : vector<1x200x256xf32> to vector<200x256xf32>
    %c0_2 = arith.constant 0 : index
    %c0_3 = arith.constant 0 : index
    %2 = vector.load %arg2[%c0_2, %c0_3] : memref<16x200xf32, #tpu.memory_space<vmem>>, vector<16x200xf32>
    %cst = arith.constant dense<0.000000e+00> : vector<16x256xf32>
    %3 = tpu.matmul %2, %1, %cst {dimension_numbers = #tpu.dot_dimension_numbers<[1], [0], [0], [1], [0, 0, 1, 1], [], []>} : vector<16x200xf32>, vector<200x256xf32>, vector<16x256xf32> -> vector<16x256xf32>
    %c0_4 = arith.constant 0 : index
    %c0_5 = arith.constant 0 : index
    %4 = vector.load %arg3[%c0_4, %c0_5] : memref<16x1xf32, #tpu.memory_space<vmem>>, vector<16x1xf32>
    %5 = vector.broadcast %4 : vector<16x1xf32> to vector<16x256xf32>
    %6 = arith.addf %3, %5 : vector<16x256xf32>
    %7 = vector.extract_strided_slice %6 {offsets = [0, 0], sizes = [4, 256], strides = [1, 1]} : vector<16x256xf32> to vector<4x256xf32>
    %cst_6 = arith.constant dense<0.000000e+00> : vector<4xf32>
    %8 = vector.multi_reduction <add>, %7, %cst_6 [1] : vector<4x256xf32> to vector<4xf32>
    %9 = vector.shape_cast %8 : vector<4xf32> to vector<4x1xf32>
    %cst_7 = arith.constant dense<0.000000e+00> : vector<1xf32>
    %10 = vector.multi_reduction <add>, %9, %cst_7 [0] : vector<4x1xf32> to vector<1xf32>
    %11 = vector.shape_cast %10 : vector<1xf32> to vector<1x1xf32>
    %cst_8 = arith.constant 9.765625E-4 : f32
    %12 = vector.broadcast %cst_8 : f32 to vector<1x1xf32>
    %13 = arith.mulf %11, %12 : vector<1x1xf32>
    %14 = vector.broadcast %13 : vector<1x1xf32> to vector<4x256xf32>
    %15 = arith.subf %7, %14 : vector<4x256xf32>
    %16 = arith.mulf %15, %15 : vector<4x256xf32>
    %cst_9 = arith.constant dense<0.000000e+00> : vector<4xf32>
    %17 = vector.multi_reduction <add>, %16, %cst_9 [1] : vector<4x256xf32> to vector<4xf32>
    %18 = vector.shape_cast %17 : vector<4xf32> to vector<4x1xf32>
    %cst_10 = arith.constant dense<0.000000e+00> : vector<1xf32>
    %19 = vector.multi_reduction <add>, %18, %cst_10 [0] : vector<4x1xf32> to vector<1xf32>
    %20 = vector.shape_cast %19 : vector<1xf32> to vector<1x1xf32>
    %cst_11 = arith.constant 9.765625E-4 : f32
    %21 = vector.broadcast %cst_11 : f32 to vector<1x1xf32>
    %22 = arith.mulf %20, %21 : vector<1x1xf32>
    %cst_12 = arith.constant 9.99999974E-6 : f32
    %23 = vector.broadcast %cst_12 : f32 to vector<1x1xf32>
    %24 = arith.addf %22, %23 : vector<1x1xf32>
    %25 = math.rsqrt %24 : vector<1x1xf32>
    %26 = vector.broadcast %25 : vector<1x1xf32> to vector<4x256xf32>
    %27 = arith.mulf %15, %26 : vector<4x256xf32>
    %28 = vector.extract_strided_slice %6 {offsets = [4, 0], sizes = [4, 256], strides = [1, 1]} : vector<16x256xf32> to vector<4x256xf32>
    %cst_13 = arith.constant dense<0.000000e+00> : vector<4xf32>
    %29 = vector.multi_reduction <add>, %28, %cst_13 [1] : vector<4x256xf32> to vector<4xf32>
    %30 = vector.shape_cast %29 : vector<4xf32> to vector<4x1xf32>
    %cst_14 = arith.constant dense<0.000000e+00> : vector<1xf32>
    %31 = vector.multi_reduction <add>, %30, %cst_14 [0] : vector<4x1xf32> to vector<1xf32>
    %32 = vector.shape_cast %31 : vector<1xf32> to vector<1x1xf32>
    %cst_15 = arith.constant 9.765625E-4 : f32
    %33 = vector.broadcast %cst_15 : f32 to vector<1x1xf32>
    %34 = arith.mulf %32, %33 : vector<1x1xf32>
    %35 = vector.broadcast %34 : vector<1x1xf32> to vector<4x256xf32>
    %36 = arith.subf %28, %35 : vector<4x256xf32>
    %37 = arith.mulf %36, %36 : vector<4x256xf32>
    %cst_16 = arith.constant dense<0.000000e+00> : vector<4xf32>
    %38 = vector.multi_reduction <add>, %37, %cst_16 [1] : vector<4x256xf32> to vector<4xf32>
    %39 = vector.shape_cast %38 : vector<4xf32> to vector<4x1xf32>
    %cst_17 = arith.constant dense<0.000000e+00> : vector<1xf32>
    %40 = vector.multi_reduction <add>, %39, %cst_17 [0] : vector<4x1xf32> to vector<1xf32>
    %41 = vector.shape_cast %40 : vector<1xf32> to vector<1x1xf32>
    %cst_18 = arith.constant 9.765625E-4 : f32
    %42 = vector.broadcast %cst_18 : f32 to vector<1x1xf32>
    %43 = arith.mulf %41, %42 : vector<1x1xf32>
    %cst_19 = arith.constant 9.99999974E-6 : f32
    %44 = vector.broadcast %cst_19 : f32 to vector<1x1xf32>
    %45 = arith.addf %43, %44 : vector<1x1xf32>
    %46 = math.rsqrt %45 : vector<1x1xf32>
    %47 = vector.broadcast %46 : vector<1x1xf32> to vector<4x256xf32>
    %48 = arith.mulf %36, %47 : vector<4x256xf32>
    %49 = vector.extract_strided_slice %6 {offsets = [8, 0], sizes = [4, 256], strides = [1, 1]} : vector<16x256xf32> to vector<4x256xf32>
    %cst_20 = arith.constant dense<0.000000e+00> : vector<4xf32>
    %50 = vector.multi_reduction <add>, %49, %cst_20 [1] : vector<4x256xf32> to vector<4xf32>
    %51 = vector.shape_cast %50 : vector<4xf32> to vector<4x1xf32>
    %cst_21 = arith.constant dense<0.000000e+00> : vector<1xf32>
    %52 = vector.multi_reduction <add>, %51, %cst_21 [0] : vector<4x1xf32> to vector<1xf32>
    %53 = vector.shape_cast %52 : vector<1xf32> to vector<1x1xf32>
    %cst_22 = arith.constant 9.765625E-4 : f32
    %54 = vector.broadcast %cst_22 : f32 to vector<1x1xf32>
    %55 = arith.mulf %53, %54 : vector<1x1xf32>
    %56 = vector.broadcast %55 : vector<1x1xf32> to vector<4x256xf32>
    %57 = arith.subf %49, %56 : vector<4x256xf32>
    %58 = arith.mulf %57, %57 : vector<4x256xf32>
    %cst_23 = arith.constant dense<0.000000e+00> : vector<4xf32>
    %59 = vector.multi_reduction <add>, %58, %cst_23 [1] : vector<4x256xf32> to vector<4xf32>
    %60 = vector.shape_cast %59 : vector<4xf32> to vector<4x1xf32>
    %cst_24 = arith.constant dense<0.000000e+00> : vector<1xf32>
    %61 = vector.multi_reduction <add>, %60, %cst_24 [0] : vector<4x1xf32> to vector<1xf32>
    %62 = vector.shape_cast %61 : vector<1xf32> to vector<1x1xf32>
    %cst_25 = arith.constant 9.765625E-4 : f32
    %63 = vector.broadcast %cst_25 : f32 to vector<1x1xf32>
    %64 = arith.mulf %62, %63 : vector<1x1xf32>
    %cst_26 = arith.constant 9.99999974E-6 : f32
    %65 = vector.broadcast %cst_26 : f32 to vector<1x1xf32>
    %66 = arith.addf %64, %65 : vector<1x1xf32>
    %67 = math.rsqrt %66 : vector<1x1xf32>
    %68 = vector.broadcast %67 : vector<1x1xf32> to vector<4x256xf32>
    %69 = arith.mulf %57, %68 : vector<4x256xf32>
    %70 = vector.extract_strided_slice %6 {offsets = [12, 0], sizes = [4, 256], strides = [1, 1]} : vector<16x256xf32> to vector<4x256xf32>
    %cst_27 = arith.constant dense<0.000000e+00> : vector<4xf32>
    %71 = vector.multi_reduction <add>, %70, %cst_27 [1] : vector<4x256xf32> to vector<4xf32>
    %72 = vector.shape_cast %71 : vector<4xf32> to vector<4x1xf32>
    %cst_28 = arith.constant dense<0.000000e+00> : vector<1xf32>
    %73 = vector.multi_reduction <add>, %72, %cst_28 [0] : vector<4x1xf32> to vector<1xf32>
    %74 = vector.shape_cast %73 : vector<1xf32> to vector<1x1xf32>
    %cst_29 = arith.constant 9.765625E-4 : f32
    %75 = vector.broadcast %cst_29 : f32 to vector<1x1xf32>
    %76 = arith.mulf %74, %75 : vector<1x1xf32>
    %77 = vector.broadcast %76 : vector<1x1xf32> to vector<4x256xf32>
    %78 = arith.subf %70, %77 : vector<4x256xf32>
    %79 = arith.mulf %78, %78 : vector<4x256xf32>
    %cst_30 = arith.constant dense<0.000000e+00> : vector<4xf32>
    %80 = vector.multi_reduction <add>, %79, %cst_30 [1] : vector<4x256xf32> to vector<4xf32>
    %81 = vector.shape_cast %80 : vector<4xf32> to vector<4x1xf32>
    %cst_31 = arith.constant dense<0.000000e+00> : vector<1xf32>
    %82 = vector.multi_reduction <add>, %81, %cst_31 [0] : vector<4x1xf32> to vector<1xf32>
    %83 = vector.shape_cast %82 : vector<1xf32> to vector<1x1xf32>
    %cst_32 = arith.constant 9.765625E-4 : f32
    %84 = vector.broadcast %cst_32 : f32 to vector<1x1xf32>
    %85 = arith.mulf %83, %84 : vector<1x1xf32>
    %cst_33 = arith.constant 9.99999974E-6 : f32
    %86 = vector.broadcast %cst_33 : f32 to vector<1x1xf32>
    %87 = arith.addf %85, %86 : vector<1x1xf32>
    %88 = math.rsqrt %87 : vector<1x1xf32>
    %89 = vector.broadcast %88 : vector<1x1xf32> to vector<4x256xf32>
    %90 = arith.mulf %78, %89 : vector<4x256xf32>
    %91 = tpu.concatenate %27, %48, %69, %90 in 0 : vector<4x256xf32>, vector<4x256xf32>, vector<4x256xf32>, vector<4x256xf32> -> vector<16x256xf32>
    %c0_34 = arith.constant 0 : index
    %c0_35 = arith.constant 0 : index
    %92 = vector.load %arg4[%c0_34, %c0_35] : memref<16x1xf32, #tpu.memory_space<vmem>>, vector<16x1xf32>
    %93 = vector.broadcast %92 : vector<16x1xf32> to vector<16x256xf32>
    %94 = arith.mulf %91, %93 : vector<16x256xf32>
    %c0_36 = arith.constant 0 : index
    %c0_37 = arith.constant 0 : index
    %95 = vector.load %arg5[%c0_36, %c0_37] : memref<16x1xf32, #tpu.memory_space<vmem>>, vector<16x1xf32>
    %96 = vector.broadcast %95 : vector<16x1xf32> to vector<16x256xf32>
    %97 = arith.addf %94, %96 : vector<16x256xf32>
    %98 = arith.negf %97 : vector<16x256xf32>
    %99 = math.exp %98 : vector<16x256xf32>
    %cst_38 = arith.constant 1.000000e+00 : f32
    %100 = vector.broadcast %cst_38 : f32 to vector<16x256xf32>
    %101 = arith.addf %100, %99 : vector<16x256xf32>
    %102 = arith.divf %100, %101 : vector<16x256xf32>
    %103 = arith.mulf %97, %102 : vector<16x256xf32>
    %c0_39 = arith.constant 0 : index
    %c0_40 = arith.constant 0 : index
    %104 = vector.load %arg6[%c0_39, %c0_40] : memref<8x16xf32, #tpu.memory_space<vmem>>, vector<8x16xf32>
    %cst_41 = arith.constant dense<0.000000e+00> : vector<8x256xf32>
    %105 = tpu.matmul %104, %103, %cst_41 {dimension_numbers = #tpu.dot_dimension_numbers<[1], [0], [0], [1], [0, 0, 1, 1], [], []>} : vector<8x16xf32>, vector<16x256xf32>, vector<8x256xf32> -> vector<8x256xf32>
    %c0_42 = arith.constant 0 : index
    %c0_43 = arith.constant 0 : index
    %106 = vector.load %arg7[%c0_42, %c0_43] : memref<8x1xf32, #tpu.memory_space<vmem>>, vector<8x1xf32>
    %107 = vector.broadcast %106 : vector<8x1xf32> to vector<8x256xf32>
    %108 = arith.addf %105, %107 : vector<8x256xf32>
    %109 = vector.extract_strided_slice %1 {offsets = [96, 0], sizes = [8, 256], strides = [1, 1]} : vector<200x256xf32> to vector<8x256xf32>
    %110 = arith.addf %108, %109 : vector<8x256xf32>
    %c0_44 = arith.constant 0 : index
    %c0_45 = arith.constant 0 : index
    %c0_46 = arith.constant 0 : index
    %111 = vector.load %arg8[%c0_44, %c0_45, %c0_46] : memref<1x8x256xf32, #tpu.memory_space<vmem>>, vector<1x8x256xf32>
    %112 = vector.shape_cast %111 : vector<1x8x256xf32> to vector<8x256xf32>
    %113 = vector.shape_cast %110 : vector<8x256xf32> to vector<1x8x256xf32>
    tpu.vector_store %arg8[%c0_44, %c0_45, %c0_46], %113 {strides = array<i32>} : memref<1x8x256xf32, #tpu.memory_space<vmem>>, vector<1x8x256xf32>,
    return
  }
  func.func @transform_0(%arg0: i32) -> (i32, i32, i32) {
    %c0_i32 = arith.constant 0 : i32
    %c0_i32_0 = arith.constant 0 : i32
    %c0_i32_1 = arith.constant 0 : i32
    return %arg0, %c0_i32, %c0_i32_0 : i32, i32, i32
  }
  func.func @transform_1(%arg0: i32) -> (i32, i32) {
    %c0_i32 = arith.constant 0 : i32
    %c0_i32_0 = arith.constant 0 : i32
    %c0_i32_1 = arith.constant 0 : i32
    return %c0_i32, %c0_i32_0 : i32, i32
  }
  func.func @transform_2(%arg0: i32) -> (i32, i32) {
    %c0_i32 = arith.constant 0 : i32
    %c0_i32_0 = arith.constant 0 : i32
    %c0_i32_1 = arith.constant 0 : i32
    return %c0_i32, %c0_i32_0 : i32, i32
  }
  func.func @transform_3(%arg0: i32) -> (i32, i32) {
    %c0_i32 = arith.constant 0 : i32
    %c0_i32_0 = arith.constant 0 : i32
    %c0_i32_1 = arith.constant 0 : i32
    return %c0_i32, %c0_i32_0 : i32, i32
  }
  func.func @transform_4(%arg0: i32) -> (i32, i32) {
    %c0_i32 = arith.constant 0 : i32
    %c0_i32_0 = arith.constant 0 : i32
    %c0_i32_1 = arith.constant 0 : i32
    return %c0_i32, %c0_i32_0 : i32, i32
  }
  func.func @transform_5(%arg0: i32) -> (i32, i32) {
    %c0_i32 = arith.constant 0 : i32
    %c0_i32_0 = arith.constant 0 : i32
    %c0_i32_1 = arith.constant 0 : i32
    return %c0_i32, %c0_i32_0 : i32, i32
  }
  func.func @transform_6(%arg0: i32) -> (i32, i32) {
    %c0_i32 = arith.constant 0 : i32
    %c0_i32_0 = arith.constant 0 : i32
    %c0_i32_1 = arith.constant 0 : i32
    return %c0_i32, %c0_i32_0 : i32, i32
  }
  func.func @transform_7(%arg0: i32) -> (i32, i32, i32) {
    %c0_i32 = arith.constant 0 : i32
    %c0_i32_0 = arith.constant 0 : i32
    %c0_i32_1 = arith.constant 0 : i32
    return %arg0, %c0_i32, %c0_i32_0 : i32, i32, i32
  }
}

</mosaic_0001>

<bundles_post_ra>
// kernel: encoder_forward.3
= control target key start
LH: loop header
LB: loop body
LE: loop exit
PB: predicated region body
PF: predicated region fallthrough
CT: control target
= control target key end

     0   :  { %s970_s24 = smov 0   ;;  %s1183_s0 = inlined_call_operand.vmem [shape: f32[2,100,256], index: 0, kind: input, shape index: {}]   ;;  %s1184_s1 = inlined_call_operand.vmem [shape: f32[18,100], index: 1, kind: input, shape index: {}]   ;;  %s1185_s2 = inlined_call_operand.vmem [shape: f32[18,1], index: 2, kind: input, shape index: {}]   ;;  %s1186_s3 = inlined_call_operand.vmem [shape: f32[12,1], index: 3, kind: input, shape index: {}]   ;;  %s1187_s4 = inlined_call_operand.vmem [shape: f32[12,1], index: 4, kind: input, shape index: {}]   ;;  %s1188_s5 = inlined_call_operand.vmem [shape: f32[6,12], index: 5, kind: input, shape index: {}]   ;;  %s1189_s6 = inlined_call_operand.vmem [shape: f32[6,1], index: 6, kind: input, shape index: {}]   ;;  %s1190_s7 = inlined_call_operand.vmem [shape: f32[2,6,256], index: 7, kind: output, shape index: {}]  }
   0x1 LB: > { %s834_s25 = sadd.s32 4294967295, %s926_s24   ;;  %p838_p0 = scmp.ge.s32.totalorder %s926_s24, 1  ;;  %s926_s24 = sphi %s970_s24, %s17_s24  }
   0x2   : > { %p237_p1 = scmp.lt.s32.totalorder %s926_s24, 3 }
   0x4   : > { %p238_p2 = pnand %p838_p0, %p237_p1 }
   0x5   : > { %p269_p3 = scmp.lt.s32.totalorder (!%p238_p2), %s834_s25, 1 }
   0x6   : > { %241 = sbr.rel (%p238_p2) target bundleno = 842 (0x34a), region = 48 }
   0xb   : > { %v928_v0 = vmov 0.0   ;;  %v308_v1 = vld [vmem:[%s1185_s2] sm:$0xff]  ;;  %s1192_s25 = smov (!%p269_p3, %s834_s25), 1  ;;  %v929_v2 = vmov 0   ;;  %v309_v3 = vld [vmem:[%s1185_s2 + $0x8] sm:$0xff]  ;;  %vm336_vm0 = vcmask 1043456  }
   0xc   : > { %407 = vmatprep.mubr.f32.mxu0 %v928_v0  ;;  %419 = vmatprep.mubr.f32.mxu1 %v928_v0  ;;  %s883_s28 = smul.u32 208, %s1192_s25  ;;  %v305_v30 = vld [vmem:[%s1184_s1] sm:$0xff]  ;;  %vm326_vm1 = vcmask 818176   ;;  %v307_v31 = vld [vmem:[%s1184_s1 + $0x10] sm:$0x3]  ;;  %v306_v32 = vld [vmem:[%s1184_s1 + $0x8] sm:$0xff] }
   0xd   : > { %894 = vset.pattern.permute.xlu0 %v929_v2  ;;  %895 = vset.pattern.permute.xlu1 %v929_v2  ;;  %vm502_vm2 = vcmask 1047558   ;;  %vm567_vm3 = vcmask 1043457   ;;  %vm508_vm4 = vcmask 1040384   ;;  %vm461_vm5 = vcmask 1045507   ;;  %v615_v58 = vld [vmem:[%s1186_s3] sm:$0xff] }
   0xe   : > { %313 = vperm.xlu0 %894, %v308_v1   ;;  %s992_s10 = scalar_lea.vmem %s1183_s0, %s883_s28  ;;  %vm426_vm6 = vcmask 1042432   ;;  %v310_v59 = vld [vmem:[%s1185_s2 + $0x10] sm:$0x3]  ;;  %vm516_vm7 = vcmask 1041408   ;;  %vm610_vm8 = vcmask 1045504   ;;  %vm682_vm9 = vcmask 97280  }
   0xf   : > { %v304_v4 = vld [vmem:[%s992_s10 + $0xc8] sm:$0xf]  ;;  %v303_v5 = vld [vmem:[%s992_s10 + $0xc0] sm:$0xf]  ;;  %v302_v6 = vld [vmem:[%s992_s10 + $0xb8] sm:$0xff] }
  0x10   : > { %842 = vmatprep.subr.msk.mxu0 %vm336_vm0, %v304_v4  ;;  %v301_v7 = vld [vmem:[%s992_s10 + $0xb0] sm:$0xff]  ;;  %857 = vmatprep.subr.msk.mxu1 %vm336_vm0, %v304_v4  ;;  %v300_v8 = vld [vmem:[%s992_s10 + $0xa8] sm:$0xff]  ;;  %v299_v9 = vld [vmem:[%s992_s10 + $0xa0] sm:$0xff] }
  0x11   : > { %843 = vmatpush1.msk.msra.mxu0 %vm336_vm0, %v303_v5  ;;  %870 = vmatpush1.msk.msra.mxu1 %vm336_vm0, %v303_v5  ;;  %v298_v10 = vld [vmem:[%s992_s10 + $0x98] sm:$0xff]  ;;  %v297_v11 = vld [vmem:[%s992_s10 + $0x90] sm:$0xff]  ;;  %v296_v12 = vld [vmem:[%s992_s10 + $0x88] sm:$0xff] }
  0x12   : > { %318 = vperm.xlu0 %894, %v309_v3   ;;  %351 = vmatprep.subr.mxu0 %v302_v6  ;;  %v295_v13 = vld [vmem:[%s992_s10 + $0x80] sm:$0xff]  ;;  %v294_v14 = vld [vmem:[%s992_s10 + $0x78] sm:$0xff]  ;;  %v293_v15 = vld [vmem:[%s992_s10 + $0x70] sm:$0xff] }
  0x13   : > { %858 = vmatprep.subr.mxu1 %v302_v6  ;;  %352 = vmatpush1.msra.mxu0 %v301_v7  ;;  %v292_v16 = vld [vmem:[%s992_s10 + $0x68] sm:$0xff]  ;;  %v291_v17 = vld [vmem:[%s992_s10 + $0x60] sm:$0xff]  ;;  %v290_v18 = vld [vmem:[%s992_s10 + $0x58] sm:$0xff] }
  0x14   : > { %871 = vmatpush1.msra.mxu1 %v301_v7  ;;  %353 = vmatprep.subr.mxu0 %v300_v8  ;;  %v289_v19 = vld [vmem:[%s992_s10 + $0x50] sm:$0xff]  ;;  %v288_v20 = vld [vmem:[%s992_s10 + $0x48] sm:$0xff]  ;;  %v287_v21 = vld [vmem:[%s992_s10 + $0x40] sm:$0xff] }
  0x15   : > { %859 = vmatprep.subr.mxu1 %v300_v8  ;;  %354 = vmatpush1.msra.mxu0 %v299_v9  ;;  %v286_v22 = vld [vmem:[%s992_s10 + $0x38] sm:$0xff]  ;;  %v285_v23 = vld [vmem:[%s992_s10 + $0x30] sm:$0xff]  ;;  %v284_v24 = vld [vmem:[%s992_s10 + $0x28] sm:$0xff] }
  0x16   : > { %872 = vmatpush1.msra.mxu1 %v299_v9  ;;  %355 = vmatprep.subr.mxu0 %v298_v10  ;;  %v283_v25 = vld [vmem:[%s992_s10 + $0x20] sm:$0xff]  ;;  %v282_v26 = vld [vmem:[%s992_s10 + $0x18] sm:$0xff]  ;;  %v281_v27 = vld [vmem:[%s992_s10 + $0x10] sm:$0xff] }
  0x17   : > { %860 = vmatprep.subr.mxu1 %v298_v10  ;;  %356 = vmatpush1.msra.mxu0 %v297_v11  ;;  %v280_v28 = vld [vmem:[%s992_s10 + $0x8] sm:$0xff]  ;;  %v279_v29 = vld [vmem:[%s992_s10] sm:$0xff]  ;;  %s856_s10 = sshll.u32 %s1192_s25, 4 }
  0x18   : > { %873 = vmatpush1.msra.mxu1 %v297_v11  ;;  %357 = vmatprep.subr.mxu0 %v296_v12  ;;  %s278_s13 = scalar_lea.vmem %s1190_s7, %s856_s10 }
  0x19   : > { %861 = vmatprep.subr.mxu1 %v296_v12  ;;  %358 = vmatpush1.msra.mxu0 %v295_v13 }
  0x1a   : > { %874 = vmatpush1.msra.mxu1 %v295_v13  ;;  %359 = vmatprep.subr.mxu0 %v294_v14 }
  0x1b   : > { %862 = vmatprep.subr.mxu1 %v294_v14  ;;  %360 = vmatpush1.msra.mxu0 %v293_v15 }
  0x1c   : > { %875 = vmatpush1.msra.mxu1 %v293_v15  ;;  %361 = vmatprep.subr.mxu0 %v292_v16 }
  0x1d   : > { %863 = vmatprep.subr.mxu1 %v292_v16  ;;  %362 = vmatpush1.msra.mxu0 %v291_v17 }
  0x1e   : > { %876 = vmatpush1.msra.mxu1 %v291_v17  ;;  %363 = vmatprep.subr.mxu0 %v290_v18 }
  0x1f   : > { %864 = vmatprep.subr.mxu1 %v290_v18  ;;  %364 = vmatpush1.msra.mxu0 %v289_v19 }
  0x20   : > { %877 = vmatpush1.msra.mxu1 %v289_v19  ;;  %365 = vmatprep.subr.mxu0 %v288_v20 }
  0x21   : > { %865 = vmatprep.subr.mxu1 %v288_v20  ;;  %366 = vmatpush1.msra.mxu0 %v287_v21 }
  0x22   : > { %878 = vmatpush1.msra.mxu1 %v287_v21  ;;  %367 = vmatprep.subr.mxu0 %v286_v22 }
  0x23   : > { %866 = vmatprep.subr.mxu1 %v286_v22  ;;  %368 = vmatpush1.msra.mxu0 %v285_v23 }
  0x24   : > { %879 = vmatpush1.msra.mxu1 %v285_v23  ;;  %369 = vmatprep.subr.mxu0 %v284_v24 }
  0x25   : > { %867 = vmatprep.subr.mxu1 %v284_v24  ;;  %370 = vmatpush1.msra.mxu0 %v283_v25 }
  0x26   : > { %880 = vmatpush1.msra.mxu1 %v283_v25  ;;  %371 = vmatprep.subr.mxu0 %v282_v26 }
  0x27   : > { %868 = vmatprep.subr.mxu1 %v282_v26  ;;  %372 = vmatpush1.msra.mxu0 %v281_v27 }
  0x28   : > { %881 = vmatpush1.msra.mxu1 %v281_v27  ;;  %373 = vmatprep.subr.mxu0 %v280_v28 }
  0x29   : > { %869 = vmatprep.subr.mxu1 %v280_v28  ;;  %374 = vmatpush1.msra.mxu0 %v279_v29 }
  0x2a   : > { %882 = vmatpush1.msra.mxu1 %v279_v29  ;;  %844 = vmatmul.mubr.msk.f32.vlgmr.msra.gmra.mxu0 %vm326_vm1, %v305_v30 }
  0x2b   : > { %846 = vmatmul.mubr.msk.f32.vlgmr.msra.gmra.mxu1 %vm326_vm1, %v307_v31  ;;  %413 = vmatprep.mubr.f32.mxu0 %v928_v0 }
  0x2c   : > { %756 = vmatprep.mubr.f32.mxu1 %v928_v0 }
  0x2e   : > { %845 = vmatmul.mubr.msk.f32.gmra.mxu0 %vm326_vm1, %v306_v32 }
  0x89   : > { %v314_v33 = vpop.permute.xlu0 %313 }
  0x8d   : > { %v319_v38 = vpop.permute.xlu0 %318 }
  0xea   : > { %v409_v34 = vpop.f32.mrf.mxu0 }
  0xeb   : > { %v1035_v35 = vadd.f32 %v409_v34, %v314_v33 }
  0xec   : > { %v411_v36 = vpop.f32.mrf.mxu0 }
  0xed   : > { %v1037_v37 = vadd.f32 %v411_v36, %v314_v33  ;;  %v503_v41 = vsel %vm502_vm2, %v1035_v35, 0.0  ;;  %v462_v53 = vsel %vm461_vm5, %v1035_v35, 0.0  ;;  %v427_v56 = vsel %vm426_vm6, %v1035_v35, 0.0 }
  0xee   : > { %v415_v39 = vpop.f32.mrf.mxu0 }
  0xef   : > { %v1039_v40 = vadd.f32 %v415_v39, %v319_v38  ;;  %v504_v42 = vsel %vm502_vm2, %v1037_v37, 0.0  ;;  %v463_v52 = vsel %vm461_vm5, %v1037_v37, 0.0  ;;  %v428_v55 = vsel %vm426_vm6, %v1037_v37, 0.0 }
  0xf0   : > { %v417_v43 = vpop.f32.mrf.mxu0  ;;  %v505_v44 = vadd.f32 %v504_v42, %v503_v41  ;;  %v464_v54 = vadd.f32 %v463_v52, %v462_v53  ;;  %v429_v57 = vadd.f32 %v428_v55, %v427_v56 }
  0xf1   : > { %v1045_v45 = vadd.f32 %v417_v43, %v319_v38  ;;  %v568_v46 = vsel %vm567_vm3, %v1039_v40, 0.0  ;;  %v509_v48 = vsel %vm508_vm4, %v1039_v40, 0.0 }
  0xf2   : > { %506 = vadd.xlane.f32.xlu1 %v505_v44 }
  0xf3   : > { %v569_v47 = vsel %vm567_vm3, %v1045_v45, 0.0  ;;  %v510_v49 = vsel %vm508_vm4, %v1045_v45, 0.0 }
  0xf4   : > { %v570_v50 = vadd.f32 %v569_v47, %v568_v46  ;;  %v511_v51 = vadd.f32 %v510_v49, %v509_v48 }
  0xf6   : > { %571 = vadd.xlane.f32.xlu0 %v570_v50  ;;  %512 = vadd.xlane.f32.xlu1 %v511_v51 }
  0xfa   : > { %465 = vadd.xlane.f32.xlu1 %v464_v54 }
  0xfe   : > { %430 = vadd.xlane.f32.xlu1 %v429_v57 }
 0x10c   : > { %619 = vperm.xlu0 %894, %v615_v58  }
 0x110   : > { %323 = vperm.xlu0 %894, %v310_v59  }
 0x17b   : > { %v507_v60 = vpop.xlane.xlu1 %506 }
 0x17c   : > { %v517_v63 = vrot.slane %v507_v60, 6 }
 0x17f   : > { %v572_v61 = vpop.xlane.xlu0 %571  ;;  %v513_v62 = vpop.xlane.xlu1 %512 }
 0x180   : > { %v574_v0 = vrot.slane %v572_v61, 1  ;;  %v518_v1 = vrot.slane %v513_v62, 6 }
 0x182   : > { %v576_v2 = vsel %vm426_vm6, %v574_v0, 0.0  ;;  %v519_v3 = vsel %vm516_vm7, %v517_v63, %v518_v1 }
 0x183   : > { %v577_v4 = vrot.slane %v576_v2, 4  ;;  %v521_v5 = vsel %vm426_vm6, %v519_v3, 0.0  ;;  %v466_v6 = vpop.xlane.xlu1 %465 }
 0x184   : > { %v522_v7 = vrot.slane %v521_v5, 4  ;;  %v468_v8 = vrot.slane %v466_v6, 3 }
 0x185   : > { %v578_v9 = vadd.f32 %v577_v4, %v576_v2 }
 0x186   : > { %v523_v10 = vadd.f32 %v522_v7, %v521_v5  ;;  %v470_v11 = vsel %vm426_vm6, %v468_v8, 0.0 }
 0x187   : > { %v579_v12 = vrot.slane %v578_v9, 2  ;;  %v471_v13 = vrot.slane %v470_v11, 4  ;;  %v431_v14 = vpop.xlane.xlu1 %430 }
 0x188   : > { %v524_v15 = vrot.slane %v523_v10, 2  ;;  %v432_v16 = vsel %vm426_vm6, %v431_v14, 0.0  ;;  %v676_v14 = vld [vmem:[%s1189_s6] sm:$0x3f] }
 0x189   : > { %v580_v17 = vadd.f32 %v579_v12, %v578_v9  ;;  %v472_v18 = vadd.f32 %v471_v13, %v470_v11  ;;  %v433_v19 = vrot.slane %v432_v16, 4  ;;  %v616_v11 = vld [vmem:[%s1186_s3 + $0x8] sm:$0xf]  ;;  %v631_v13 = vld [vmem:[%s1187_s4] sm:$0xff] }
 0x18a   : > { %v525_v20 = vadd.f32 %v524_v15, %v523_v10  ;;  %v632_v12 = vld [vmem:[%s1187_s4 + $0x8] sm:$0xf] }
 0x18b   : > { %v581_v21 = vrot.slane %v580_v17, 1  ;;  %v473_v22 = vrot.slane %v472_v18, 2  ;;  %v434_v23 = vadd.f32 %v433_v19, %v432_v16 }
 0x18c   : > { %v526_v24 = vrot.slane %v525_v20, 1 }
 0x18d   : > { %v582_v25 = vadd.f32 %v581_v21, %v580_v17  ;;  %v474_v26 = vadd.f32 %v473_v22, %v472_v18  ;;  %v435_v27 = vrot.slane %v434_v23, 2 }
 0x18e   : > { %v527_v28 = vadd.f32 %v526_v24, %v525_v20 }
 0x18f   : > { %v583_v29 = vmul.f32 0.0013020834, %v582_v25  ;;  %v475_v30 = vrot.slane %v474_v26, 1  ;;  %v436_v31 = vadd.f32 %v435_v27, %v434_v23 }
 0x190   : > { %v528_v33 = vmul.f32 0.0013020834, %v527_v28 }
 0x191   : > { %v476_v32 = vadd.f32 %v475_v30, %v474_v26  ;;  %v437_v34 = vrot.slane %v436_v31, 1  ;;  %v1075_v38 = vsub.f32 %v1039_v40, %v583_v29  ;;  %v1078_v39 = vsub.f32 %v1045_v45, %v583_v29 }
 0x192   : > { %v1087_v44 = vsub.f32 %v1035_v35, %v528_v33  ;;  %v1090_v46 = vsub.f32 %v1037_v37, %v528_v33  ;;  %v1105_v55 = vsub.f32 %v1039_v40, %v528_v33  ;;  %v1108_v56 = vsub.f32 %v1045_v45, %v528_v33 }
 0x193   : > { %v477_v36 = vmul.f32 0.0013020834, %v476_v32  ;;  %v438_v43 = vadd.f32 %v437_v34, %v436_v31  ;;  %v586_v49 = vmul.f32 %v1075_v38, %v1075_v38  ;;  %v587_v50 = vmul.f32 %v1078_v39, %v1078_v39 }
 0x194   : > { %v533_v54 = vmul.f32 %v1087_v44, %v1087_v44  ;;  %v534_v60 = vmul.f32 %v1090_v46, %v1090_v46  ;;  %v535_v62 = vmul.f32 %v1105_v55, %v1105_v55  ;;  %v536_v63 = vmul.f32 %v1108_v56, %v1108_v56 }
 0x195   : > { %v1081_v41 = vsub.f32 %v1035_v35, %v477_v36  ;;  %v1084_v42 = vsub.f32 %v1037_v37, %v477_v36  ;;  %v439_v57 = vmul.f32 0.0013020834, %v438_v43  ;;  %v588_v58 = vsel %vm567_vm3, %v586_v49, 0.0 }
 0x196   : > { %v589_v59 = vsel %vm567_vm3, %v587_v50, 0.0  ;;  %v537_v0 = vsel %vm502_vm2, %v533_v54, 0.0  ;;  %v538_v1 = vsel %vm502_vm2, %v534_v60, 0.0  ;;  %v542_v5 = vsel %vm508_vm4, %v535_v62, 0.0 }
 0x197   : > { %v480_v47 = vmul.f32 %v1081_v41, %v1081_v41  ;;  %v481_v48 = vmul.f32 %v1084_v42, %v1084_v42  ;;  %v590_v61 = vadd.f32 %v589_v59, %v588_v58  ;;  %v1121_v2 = vsub.f32 %v1035_v35, %v439_v57 }
 0x198   : > { %v1124_v3 = vsub.f32 %v1037_v37, %v439_v57  ;;  %v539_v4 = vadd.f32 %v538_v1, %v537_v0  ;;  %v543_v6 = vsel %vm508_vm4, %v536_v63, 0.0 }
 0x199   : > { %v482_v51 = vsel %vm461_vm5, %v480_v47, 0.0  ;;  %v483_v52 = vsel %vm461_vm5, %v481_v48, 0.0  ;;  %v442_v7 = vmul.f32 %v1121_v2, %v1121_v2  ;;  %v544_v9 = vadd.f32 %v543_v6, %v542_v5 }
 0x19a   : > { %v484_v53 = vadd.f32 %v483_v52, %v482_v51  ;;  %v443_v8 = vmul.f32 %v1124_v3, %v1124_v3 }
 0x19b   : > { %v444_v35 = vsel %vm426_vm6, %v442_v7, 0.0 }
 0x19c   : > { %485 = vadd.xlane.f32.xlu1 %v484_v53  ;;  %v445_v10 = vsel %vm426_vm6, %v443_v8, 0.0 }
 0x19d   : > { %v446_v37 = vadd.f32 %v445_v10, %v444_v35 }
 0x1a0   : > { %591 = vadd.xlane.f32.xlu1 %v590_v61 }
 0x1a4   : > { %540 = vadd.xlane.f32.xlu1 %v539_v4 }
 0x1a8   : > { %545 = vadd.xlane.f32.xlu1 %v544_v9 }
 0x1ac   : > { %447 = vadd.xlane.f32.xlu1 %v446_v37 }
 0x1bd   : > { %624 = vperm.xlu1 %895, %v616_v11  }
 0x1c1   : > { %640 = vperm.xlu1 %895, %v632_v12  }
 0x1c5   : > { %635 = vperm.xlu1 %895, %v631_v13  }
 0x1c9   : > { %679 = vperm.xlu1 %895, %v676_v14  }
 0x225   : > { %v486_v15 = vpop.xlane.xlu1 %485 }
 0x226   : > { %v488_v16 = vrot.slane %v486_v15, 3 }
 0x228   : > { %v490_v17 = vsel %vm426_vm6, %v488_v16, 0.0 }
 0x229   : > { %v491_v18 = vrot.slane %v490_v17, 4  ;;  %v592_v19 = vpop.xlane.xlu1 %591 }
 0x22a   : > { %v594_v20 = vrot.slane %v592_v19, 1 }
 0x22b   : > { %v492_v21 = vadd.f32 %v491_v18, %v490_v17 }
 0x22c   : > { %v596_v22 = vsel %vm426_vm6, %v594_v20, 0.0 }
 0x22d   : > { %v493_v23 = vrot.slane %v492_v21, 2  ;;  %v597_v24 = vrot.slane %v596_v22, 4  ;;  %v541_v25 = vpop.xlane.xlu1 %540 }
 0x22e   : > { %v549_v30 = vrot.slane %v541_v25, 6 }
 0x22f   : > { %v598_v26 = vadd.f32 %v597_v24, %v596_v22  ;;  %v494_v27 = vadd.f32 %v493_v23, %v492_v21 }
 0x231   : > { %v599_v28 = vrot.slane %v598_v26, 2  ;;  %v546_v29 = vpop.xlane.xlu1 %545  ;;  %v495_v34 = vrot.slane %v494_v27, 1 }
 0x232   : > { %v550_v31 = vrot.slane %v546_v29, 6 }
 0x233   : > { %v600_v32 = vadd.f32 %v599_v28, %v598_v26  ;;  %v496_v53 = vadd.f32 %v495_v34, %v494_v27  ;;  %v620_v26 = vpop.permute.xlu0 %619 }
 0x234   : > { %v551_v33 = vsel %vm516_vm7, %v549_v30, %v550_v31 }
 0x235   : > { %v601_v36 = vrot.slane %v600_v32, 1  ;;  %v553_v43 = vsel %vm426_vm6, %v551_v33, 0.0  ;;  %v448_v47 = vpop.xlane.xlu1 %447  ;;  %v497_v61 = vmul.f32 0.0013020834, %v496_v53 }
 0x236   : > { %v554_v48 = vrot.slane %v553_v43, 4  ;;  %v449_v49 = vsel %vm426_vm6, %v448_v47, 0.0 }
 0x237   : > { %v450_v50 = vrot.slane %v449_v49, 4  ;;  %v602_v51 = vadd.f32 %v601_v36, %v600_v32  ;;  %v498_v5 = vadd.f32 1e-05, %v497_v61 }
 0x238   : > { %v555_v52 = vadd.f32 %v554_v48, %v553_v43 }
 0x239   : > { %v451_v54 = vadd.f32 %v450_v50, %v449_v49  ;;  %v603_v59 = vmul.f32 0.0013020834, %v602_v51  ;;  %v625_v10 = vpop.permute.xlu1 %624 }
 0x23a   : > { %v556_v57 = vrot.slane %v555_v52, 2 }
 0x23b   : > { %v452_v58 = vrot.slane %v451_v54, 2  ;;  %v604_v1 = vadd.f32 1e-05, %v603_v59 }
 0x23c   : > { %v557_v60 = vadd.f32 %v556_v57, %v555_v52 }
 0x23d   : > { %v453_v62 = vadd.f32 %v452_v58, %v451_v54  ;;  %896 = vrsqrt.f32 %v604_v1  ;;  %v641_v18 = vpop.permute.xlu1 %640  ;;  %v324_v1 = vpop.permute.xlu0 %323 }
 0x23e   : > { %v558_v63 = vrot.slane %v557_v60, 1  ;;  %898 = vrsqrt.f32 %v498_v5 }
 0x23f   : > { %v454_v0 = vrot.slane %v453_v62, 1 }
 0x240   : > { %v559_v4 = vadd.f32 %v558_v63, %v557_v60  ;;  %v675_v63 = vld [vmem:[%s1188_s5] sm:$0x3f] }
 0x241   : > { %v455_v6 = vadd.f32 %v454_v0, %v453_v62  ;;  %v636_v30 = vpop.permute.xlu1 %635  ;;  %v421_v0 = vpop.f32.mrf.mxu1 }
 0x242   : > { %v560_v7 = vmul.f32 0.0013020834, %v559_v4  ;;  %v422_v5 = vadd.f32 %v421_v0, %v324_v1 }
 0x243   : > { %v456_v8 = vmul.f32 0.0013020834, %v455_v6  ;;  %v423_v4 = vpop.f32.mrf.mxu1 }
 0x244   : > { %v561_v9 = vadd.f32 1e-05, %v560_v7  ;;  %v424_v6 = vadd.f32 %v423_v4, %v324_v1  ;;  %v768_v7 = vrot.slane %v422_v5, 4 }
 0x245   : > { %v457_v35 = vadd.f32 1e-05, %v456_v8 }
 0x246   : > { %900 = vrsqrt.f32 %v561_v9  ;;  %v771_v8 = vrot.slane %v424_v6, 4  ;;  %v680_v9 = vpop.permute.xlu1 %679 }
 0x247   : > { %902 = vrsqrt.f32 %v457_v35 }
 0x24a   : > { %v897_v37 = vpop.eup %896 }
 0x24b   : > { %v899_v11 = vpop.eup %898  ;;  %v606_v16 = vmul.f32 %v897_v37, %v1075_v38  ;;  %v607_v17 = vmul.f32 %v897_v37, %v1078_v39 }
 0x24c   : > { %v500_v21 = vmul.f32 %v899_v11, %v1081_v41  ;;  %v501_v22 = vmul.f32 %v899_v11, %v1084_v42 }
 0x253   : > { %v901_v12 = vpop.eup %900 }
 0x254   : > { %v903_v13 = vpop.eup %902  ;;  %v565_v14 = vmul.f32 %v901_v12, %v1105_v55  ;;  %v566_v15 = vmul.f32 %v901_v12, %v1108_v56  ;;  %v563_v55 = vmul.f32 %v901_v12, %v1087_v44  ;;  %v564_v56 = vmul.f32 %v901_v12, %v1090_v46 }
 0x255   : > { %v459_v19 = vmul.f32 %v903_v13, %v1121_v2  ;;  %v460_v20 = vmul.f32 %v903_v13, %v1124_v3  ;;  %v770_v13 = vrot.slane %v1045_v45, 4 }
 0x256   : > { %v613_v23 = vsel %vm508_vm4, %v565_v14, %v606_v16  ;;  %v614_v24 = vsel %vm508_vm4, %v566_v15, %v607_v17 }
 0x257   : > { %v629_v38 = vmul.f32 %v625_v10, %v613_v23  ;;  %v630_v25 = vmul.f32 %v625_v10, %v614_v24  ;;  %v608_v39 = vsel %vm426_vm6, %v459_v19, %v500_v21  ;;  %v609_v2 = vsel %vm426_vm6, %v460_v20, %v501_v22 }
 0x258   : > { %v611_v3 = vsel %vm610_vm8, %v608_v39, %v563_v55  ;;  %v612_v41 = vsel %vm610_vm8, %v609_v2, %v564_v56  ;;  %v767_v10 = vrot.slane %v1039_v40, 4  ;;  %v772_v16 = vsel %vm336_vm0, %v770_v13, %v771_v8 }
 0x259   : > { %v645_v42 = vadd.f32 %v641_v18, %v629_v38  ;;  %v646_v27 = vadd.f32 %v641_v18, %v630_v25  ;;  %v627_v28 = vmul.f32 %v620_v26, %v611_v3  ;;  %v628_v29 = vmul.f32 %v620_v26, %v612_v41 }
 0x25a   : > { %v769_v11 = vsel %vm336_vm0, %v767_v10, %v768_v7 }
 0x25b   : > { %v849_v31 = vmul.f32 -1.442695, %v645_v42  ;;  %v850_v44 = vmul.f32 -1.442695, %v646_v27  ;;  %v643_v32 = vadd.f32 %v636_v30, %v627_v28  ;;  %v644_v46 = vadd.f32 %v636_v30, %v628_v29 }
 0x25d   : > { %904 = vpow2.f32 %v849_v31  ;;  %v847_v33 = vmul.f32 -1.442695, %v643_v32  ;;  %v848_v34 = vmul.f32 -1.442695, %v644_v46 }
 0x25e   : > { %906 = vpow2.f32 %v850_v44 }
 0x25f   : > { %908 = vpow2.f32 %v847_v33 }
 0x260   : > { %910 = vpow2.f32 %v848_v34 }
 0x26a   : > { %v905_v36 = vpop.eup %904 }
 0x26b   : > { %v907_v43 = vpop.eup %906  ;;  %v661_v47 = vadd.f32 1.0, %v905_v36 }
 0x26c   : > { %v909_v48 = vpop.eup %908  ;;  %v662_v49 = vadd.f32 1.0, %v907_v43 }
 0x26d   : > { %v911_v50 = vpop.eup %910  ;;  %912 = vrcp.f32 %v661_v47  ;;  %v659_v51 = vadd.f32 1.0, %v909_v48 }
 0x26e   : > { %914 = vrcp.f32 %v662_v49  ;;  %v660_v52 = vadd.f32 1.0, %v911_v50 }
 0x26f   : > { %916 = vrcp.f32 %v659_v51 }
 0x270   : > { %918 = vrcp.f32 %v660_v52 }
 0x27a   : > { %v913_v53 = vpop.eup %912 }
 0x27b   : > { %v915_v54 = vpop.eup %914  ;;  %v673_v57 = vmul.f32 %v913_v53, %v645_v42 }
 0x27c   : > { %v917_v58 = vpop.eup %916  ;;  %v674_v59 = vmul.f32 %v915_v54, %v646_v27 }
 0x27d   : > { %v919_v60 = vpop.eup %918  ;;  %v671_v61 = vmul.f32 %v917_v58, %v643_v32 }
 0x27e   : > { %v672_v62 = vmul.f32 %v919_v60, %v644_v46  ;;  %851 = vmatprep.subr.msk.mxu1 %vm336_vm0, %v674_v59 }
 0x27f   : > { %852 = vmatpush1.msk.msra.mxu1 %vm336_vm0, %v673_v57 }
 0x280   : > { %722 = vmatprep.subr.mxu1 %v672_v62 }
 0x281   : > { %723 = vmatpush1.msra.mxu1 %v671_v61 }
 0x282   : > { %853 = vmatmul.mubr.msk.f32.vlgmr.msra.gmra.mxu1 %vm682_vm9, %v675_v63 }
 0x342   : > { %v758_v35 = vpop.f32.mrf.mxu1 }
 0x343   : > { %v759_v37 = vadd.f32 %v758_v35, %v680_v9 }
 0x344   : > { %v760_v12 = vpop.f32.mrf.mxu1 }
 0x345   : > { %v775_v14 = vadd.f32 %v769_v11, %v759_v37  ;;  %v761_v15 = vadd.f32 %v760_v12, %v680_v9 }
 0x347   : > { %777 = vst [vmem:[%s278_s13] sm:$0x3f] %v775_v14  ;;  %v776_v17 = vadd.f32 %v772_v16, %v761_v15 }
 0x349   : > { %778 = vst [vmem:[%s278_s13 + $0x8] sm:$0x3f] %v776_v17 }
 0x34a PF: > { %s17_s24 = sadd.s32 1, %s926_s24  }
 0x34b   : > { %p14_p4 = scmp.ge.s32.totalorder %s17_s24, 4  }
 0x34d   :  { %16 = sbr.rel (!%p14_p4) target bundleno = 1 (0x1), region = 78 }

// kernel: encoder_forward.4
= control target key start
LH: loop header
LB: loop body
LE: loop exit
PB: predicated region body
PF: predicated region fallthrough
CT: control target
= control target key end

     0   :  { %s942_s24 = smov 0   ;;  %s1143_s0 = inlined_call_operand.vmem [shape: f32[2,150,256], index: 0, kind: input, shape index: {}]   ;;  %s1144_s1 = inlined_call_operand.vmem [shape: f32[24,150], index: 1, kind: input, shape index: {}]   ;;  %s1145_s2 = inlined_call_operand.vmem [shape: f32[24,1], index: 2, kind: input, shape index: {}]   ;;  %s1146_s3 = inlined_call_operand.vmem [shape: f32[16,1], index: 3, kind: input, shape index: {}]   ;;  %s1147_s4 = inlined_call_operand.vmem [shape: f32[16,1], index: 4, kind: input, shape index: {}]   ;;  %s1148_s5 = inlined_call_operand.vmem [shape: f32[8,16], index: 5, kind: input, shape index: {}]   ;;  %s1149_s6 = inlined_call_operand.vmem [shape: f32[8,1], index: 6, kind: input, shape index: {}]   ;;  %s1150_s7 = inlined_call_operand.vmem [shape: f32[2,8,256], index: 7, kind: output, shape index: {}]  }
   0x1 LB: > { %s796_s25 = sadd.s32 4294967295, %s898_s24   ;;  %p800_p0 = scmp.ge.s32.totalorder %s898_s24, 1  ;;  %s898_s24 = sphi %s942_s24, %s17_s24  }
   0x2   : > { %p237_p1 = scmp.lt.s32.totalorder %s898_s24, 3 }
   0x4   : > { %p238_p2 = pnand %p800_p0, %p237_p1 }
   0x5   : > { %p269_p3 = scmp.lt.s32.totalorder (!%p238_p2), %s796_s25, 1 }
   0x6   : > { %241 = sbr.rel (%p238_p2) target bundleno = 849 (0x351), region = 48 }
   0xb   : > { %v318_v0 = vld [vmem:[%s1144_s1 + $0x8] sm:$0xff]  ;;  %vm341_vm0 = vcmask 179200   ;;  %s1152_s25 = smov (!%p269_p3, %s796_s25), 1  ;;  %v900_v2 = vmov 0   ;;  %v323_v3 = vld [vmem:[%s1145_s2] sm:$0xff]  ;;  %vm351_vm1 = vcmask 1045504  }
   0xc   : > { %806 = vmatprep.mubr.msk.f32.mxu0 %vm341_vm0, %v318_v0  ;;  %v324_v1 = vld [vmem:[%s1145_s2 + $0x8] sm:$0xff]  ;;  %866 = vset.pattern.permute.xlu0 %v900_v2  ;;  %s855_s30 = smul.u32 304, %s1152_s25  ;;  %v317_v42 = vld [vmem:[%s1144_s1] sm:$0xff]  ;;  %v320_v43 = vld [vmem:[%s1144_s1 + $0x18] sm:$0xff]  ;;  %vm476_vm2 = vcmask 1047556   ;;  %vm441_vm3 = vcmask 1043456  }
   0xd   : > { %867 = vset.pattern.permute.xlu1 %v900_v2  ;;  %333 = vperm.xlu0 %866, %v324_v1   ;;  %v319_v44 = vld [vmem:[%s1144_s1 + $0x10] sm:$0xff]  ;;  %vm662_vm4 = vcmask 130048   ;;  %s816_s16 = sshll.u32 %s1152_s25, 4 }
   0xe   : > { %s966_s12 = scalar_lea.vmem %s1143_s0, %s855_s30  ;;  %s278_s19 = scalar_lea.vmem %s1150_s7, %s816_s16 }
   0xf   : > { %v310_v4 = vld [vmem:[%s966_s12 + $0xf8] sm:$0xff]  ;;  %v309_v5 = vld [vmem:[%s966_s12 + $0xf0] sm:$0xff]  ;;  %v308_v6 = vld [vmem:[%s966_s12 + $0xe8] sm:$0xff] }
  0x10   : > { %358 = vmatprep.subr.mxu0 %v310_v4  ;;  %v307_v7 = vld [vmem:[%s966_s12 + $0xe0] sm:$0xff]  ;;  %817 = vmatprep.subr.mxu1 %v310_v4  ;;  %v306_v8 = vld [vmem:[%s966_s12 + $0xd8] sm:$0xff]  ;;  %v305_v9 = vld [vmem:[%s966_s12 + $0xd0] sm:$0xff] }
  0x11   : > { %328 = vperm.xlu0 %866, %v323_v3   ;;  %359 = vmatpush1.msra.mxu0 %v309_v5  ;;  %v304_v10 = vld [vmem:[%s966_s12 + $0xc8] sm:$0xff]  ;;  %v303_v11 = vld [vmem:[%s966_s12 + $0xc0] sm:$0xff]  ;;  %v302_v12 = vld [vmem:[%s966_s12 + $0xb8] sm:$0xff] }
  0x12   : > { %836 = vmatpush1.msra.mxu1 %v309_v5  ;;  %360 = vmatprep.subr.mxu0 %v308_v6  ;;  %v301_v13 = vld [vmem:[%s966_s12 + $0xb0] sm:$0xff]  ;;  %v300_v14 = vld [vmem:[%s966_s12 + $0xa8] sm:$0xff]  ;;  %v299_v15 = vld [vmem:[%s966_s12 + $0xa0] sm:$0xff] }
  0x13   : > { %818 = vmatprep.subr.mxu1 %v308_v6  ;;  %361 = vmatpush1.msra.mxu0 %v307_v7  ;;  %v298_v16 = vld [vmem:[%s966_s12 + $0x98] sm:$0xff]  ;;  %v297_v17 = vld [vmem:[%s966_s12 + $0x90] sm:$0xff]  ;;  %v296_v18 = vld [vmem:[%s966_s12 + $0x88] sm:$0xff] }
  0x14   : > { %837 = vmatpush1.msra.mxu1 %v307_v7  ;;  %362 = vmatprep.subr.mxu0 %v306_v8  ;;  %v295_v19 = vld [vmem:[%s966_s12 + $0x80] sm:$0xff]  ;;  %v294_v20 = vld [vmem:[%s966_s12 + $0x78] sm:$0xff]  ;;  %v293_v21 = vld [vmem:[%s966_s12 + $0x70] sm:$0xff] }
  0x15   : > { %819 = vmatprep.subr.mxu1 %v306_v8  ;;  %363 = vmatpush1.msra.mxu0 %v305_v9  ;;  %v292_v22 = vld [vmem:[%s966_s12 + $0x68] sm:$0xff]  ;;  %v291_v23 = vld [vmem:[%s966_s12 + $0x60] sm:$0xff]  ;;  %v290_v24 = vld [vmem:[%s966_s12 + $0x58] sm:$0xff] }
  0x16   : > { %838 = vmatpush1.msra.mxu1 %v305_v9  ;;  %364 = vmatprep.subr.mxu0 %v304_v10  ;;  %v289_v25 = vld [vmem:[%s966_s12 + $0x50] sm:$0xff]  ;;  %v288_v26 = vld [vmem:[%s966_s12 + $0x48] sm:$0xff]  ;;  %v287_v27 = vld [vmem:[%s966_s12 + $0x40] sm:$0xff] }
  0x17   : > { %820 = vmatprep.subr.mxu1 %v304_v10  ;;  %365 = vmatpush1.msra.mxu0 %v303_v11  ;;  %v286_v28 = vld [vmem:[%s966_s12 + $0x38] sm:$0xff]  ;;  %v285_v29 = vld [vmem:[%s966_s12 + $0x30] sm:$0xff]  ;;  %v284_v30 = vld [vmem:[%s966_s12 + $0x28] sm:$0xff] }
  0x18   : > { %839 = vmatpush1.msra.mxu1 %v303_v11  ;;  %366 = vmatprep.subr.mxu0 %v302_v12  ;;  %v283_v31 = vld [vmem:[%s966_s12 + $0x20] sm:$0xff]  ;;  %v282_v32 = vld [vmem:[%s966_s12 + $0x18] sm:$0xff]  ;;  %v281_v33 = vld [vmem:[%s966_s12 + $0x10] sm:$0xff] }
  0x19   : > { %821 = vmatprep.subr.mxu1 %v302_v12  ;;  %367 = vmatpush1.msra.mxu0 %v301_v13  ;;  %v280_v34 = vld [vmem:[%s966_s12 + $0x8] sm:$0xff]  ;;  %v279_v35 = vld [vmem:[%s966_s12] sm:$0xff]  ;;  %v314_v38 = vld [vmem:[%s966_s12 + $0x118] sm:$0xff] }
  0x1a   : > { %840 = vmatpush1.msra.mxu1 %v301_v13  ;;  %368 = vmatprep.subr.mxu0 %v300_v14  ;;  %v316_v36 = vld [vmem:[%s966_s12 + $0x128] sm:$0x3f]  ;;  %v315_v37 = vld [vmem:[%s966_s12 + $0x120] sm:$0x3f]  ;;  %v313_v39 = vld [vmem:[%s966_s12 + $0x110] sm:$0xff] }
  0x1b   : > { %822 = vmatprep.subr.mxu1 %v300_v14  ;;  %369 = vmatpush1.msra.mxu0 %v299_v15  ;;  %v312_v40 = vld [vmem:[%s966_s12 + $0x108] sm:$0xff]  ;;  %v311_v41 = vld [vmem:[%s966_s12 + $0x100] sm:$0xff] }
  0x1c   : > { %841 = vmatpush1.msra.mxu1 %v299_v15  ;;  %370 = vmatprep.subr.mxu0 %v298_v16  ;;  %v595_v3 = vld [vmem:[%s1146_s3] sm:$0xff]  ;;  %v322_v4 = vld [vmem:[%s1144_s1 + $0x28] sm:$0xff] }
  0x1d   : > { %823 = vmatprep.subr.mxu1 %v298_v16  ;;  %371 = vmatpush1.msra.mxu0 %v297_v17  ;;  %v321_v5 = vld [vmem:[%s1144_s1 + $0x20] sm:$0xff] }
  0x1e   : > { %842 = vmatpush1.msra.mxu1 %v297_v17  ;;  %372 = vmatprep.subr.mxu0 %v296_v18 }
  0x1f   : > { %824 = vmatprep.subr.mxu1 %v296_v18  ;;  %373 = vmatpush1.msra.mxu0 %v295_v19 }
  0x20   : > { %843 = vmatpush1.msra.mxu1 %v295_v19  ;;  %374 = vmatprep.subr.mxu0 %v294_v20 }
  0x21   : > { %825 = vmatprep.subr.mxu1 %v294_v20  ;;  %375 = vmatpush1.msra.mxu0 %v293_v21 }
  0x22   : > { %844 = vmatpush1.msra.mxu1 %v293_v21  ;;  %376 = vmatprep.subr.mxu0 %v292_v22 }
  0x23   : > { %826 = vmatprep.subr.mxu1 %v292_v22  ;;  %377 = vmatpush1.msra.mxu0 %v291_v23 }
  0x24   : > { %845 = vmatpush1.msra.mxu1 %v291_v23  ;;  %378 = vmatprep.subr.mxu0 %v290_v24 }
  0x25   : > { %827 = vmatprep.subr.mxu1 %v290_v24  ;;  %379 = vmatpush1.msra.mxu0 %v289_v25 }
  0x26   : > { %846 = vmatpush1.msra.mxu1 %v289_v25  ;;  %380 = vmatprep.subr.mxu0 %v288_v26 }
  0x27   : > { %828 = vmatprep.subr.mxu1 %v288_v26  ;;  %381 = vmatpush1.msra.mxu0 %v287_v27 }
  0x28   : > { %847 = vmatpush1.msra.mxu1 %v287_v27  ;;  %382 = vmatprep.subr.mxu0 %v286_v28 }
  0x29   : > { %829 = vmatprep.subr.mxu1 %v286_v28  ;;  %383 = vmatpush1.msra.mxu0 %v285_v29 }
  0x2a   : > { %848 = vmatpush1.msra.mxu1 %v285_v29  ;;  %384 = vmatprep.subr.mxu0 %v284_v30 }
  0x2b   : > { %830 = vmatprep.subr.mxu1 %v284_v30  ;;  %385 = vmatpush1.msra.mxu0 %v283_v31 }
  0x2c   : > { %849 = vmatpush1.msra.mxu1 %v283_v31  ;;  %386 = vmatprep.subr.mxu0 %v282_v32 }
  0x2d   : > { %831 = vmatprep.subr.mxu1 %v282_v32  ;;  %387 = vmatpush1.msra.mxu0 %v281_v33 }
  0x2e   : > { %850 = vmatpush1.msra.mxu1 %v281_v33  ;;  %388 = vmatprep.subr.mxu0 %v280_v34 }
  0x2f   : > { %832 = vmatprep.subr.mxu1 %v280_v34  ;;  %389 = vmatpush1.msra.mxu0 %v279_v35 }
  0x30   : > { %851 = vmatpush1.msra.mxu1 %v279_v35  ;;  %804 = vmatprep.subr.msk.mxu0 %vm351_vm1, %v316_v36 }
  0x31   : > { %833 = vmatprep.subr.msk.mxu1 %vm351_vm1, %v316_v36  ;;  %805 = vmatpush2.msk.msra.mxu0 %vm351_vm1, %v315_v37 }
  0x32   : > { %852 = vmatpush2.msk.msra.mxu1 %vm351_vm1, %v315_v37  ;;  %418 = vmatprep.subr.mxu0 %v314_v38 }
  0x33   : > { %834 = vmatprep.subr.mxu1 %v314_v38  ;;  %419 = vmatpush2.msra.mxu0 %v313_v39 }
  0x34   : > { %853 = vmatpush2.msra.mxu1 %v313_v39  ;;  %420 = vmatprep.subr.mxu0 %v312_v40 }
  0x35   : > { %835 = vmatprep.subr.mxu1 %v312_v40  ;;  %421 = vmatpush2.msra.mxu0 %v311_v41 }
  0x36   : > { %854 = vmatpush2.msra.mxu1 %v311_v41  ;;  %423 = vmatmul.mubr.f32.vlgmr.msra.gmra.mxu0 %v317_v42 }
  0x37   : > { %807 = vmatprep.mubr.msk.f32.mxu0 %vm341_vm0, %v320_v43  ;;  %808 = vmatprep.mubr.msk.f32.mxu1 %vm341_vm0, %v322_v4 }
  0x38   : > { %435 = vmatmul.mubr.f32.vlgmr.msra.gmra.mxu1 %v321_v5 }
  0x3a   : > { %429 = vmatmul.mubr.f32.gmra.mxu0 %v319_v44 }
  0x88   : > { %v334_v45 = vpop.permute.xlu0 %333 }
  0x8c   : > { %v329_v49 = vpop.permute.xlu0 %328 }
  0xf6   : > { %v424_v46 = vpop.f32.mrf.mxu0 }
  0xf7   : > { %v1022_v54 = vadd.f32 %v424_v46, %v329_v49 }
  0xf8   : > { %v426_v47 = vpop.f32.mrf.mxu0 }
  0xf9   : > { %v1018_v52 = vadd.f32 %v426_v47, %v329_v49  ;;  %v477_v62 = vsel %vm476_vm2, %v1022_v54, 0.0  ;;  %v442_v1 = vsel %vm441_vm3, %v1022_v54, 0.0 }
  0xfa   : > { %v430_v48 = vpop.f32.mrf.mxu0 }
  0xfb   : > { %v1016_v50 = vadd.f32 %v430_v48, %v334_v45  ;;  %v478_v61 = vsel %vm476_vm2, %v1018_v52, 0.0  ;;  %v443_v0 = vsel %vm441_vm3, %v1018_v52, 0.0 }
  0xfc   : > { %v432_v51 = vpop.f32.mrf.mxu0  ;;  %v479_v63 = vadd.f32 %v478_v61, %v477_v62  ;;  %v444_v2 = vadd.f32 %v443_v0, %v442_v1 }
  0xfd   : > { %v1020_v53 = vadd.f32 %v432_v51, %v334_v45  ;;  %v551_v55 = vsel %vm476_vm2, %v1016_v50, 0.0  ;;  %v517_v57 = vsel %vm441_vm3, %v1016_v50, 0.0 }
  0xff   : > { %v552_v56 = vsel %vm476_vm2, %v1020_v53, 0.0  ;;  %v518_v58 = vsel %vm441_vm3, %v1020_v53, 0.0 }
 0x100   : > { %v553_v59 = vadd.f32 %v552_v56, %v551_v55  ;;  %v519_v60 = vadd.f32 %v518_v58, %v517_v57 }
 0x102   : > { %554 = vadd.xlane.f32.xlu1 %v553_v59  ;;  %520 = vadd.xlane.f32.xlu0 %v519_v60 }
 0x106   : > { %480 = vadd.xlane.f32.xlu1 %v479_v63 }
 0x10a   : > { %445 = vadd.xlane.f32.xlu1 %v444_v2 }
 0x118   : > { %599 = vperm.xlu0 %866, %v595_v3  }
 0x18b   : > { %v555_v6 = vpop.xlane.xlu1 %554  ;;  %v521_v7 = vpop.xlane.xlu0 %520 }
 0x18c   : > { %v557_v8 = vrot.slane %v555_v6, 4  ;;  %v522_v9 = vsel %vm441_vm3, %v521_v7, 0.0 }
 0x18d   : > { %v523_v10 = vrot.slane %v522_v9, 4 }
 0x18e   : > { %v559_v11 = vsel %vm441_vm3, %v557_v8, 0.0  ;;  %v596_v8 = vld [vmem:[%s1146_s3 + $0x8] sm:$0xff] }
 0x18f   : > { %v560_v12 = vrot.slane %v559_v11, 4  ;;  %v524_v13 = vadd.f32 %v523_v10, %v522_v9  ;;  %v481_v14 = vpop.xlane.xlu1 %480  ;;  %v612_v9 = vld [vmem:[%s1147_s4 + $0x8] sm:$0xff]  ;;  %v611_v10 = vld [vmem:[%s1147_s4] sm:$0xff] }
 0x190   : > { %v483_v15 = vrot.slane %v481_v14, 4 }
 0x191   : > { %v561_v16 = vadd.f32 %v560_v12, %v559_v11  ;;  %v525_v17 = vrot.slane %v524_v13, 2  ;;  %v325_v11 = vld [vmem:[%s1145_s2 + $0x10] sm:$0xff]  ;;  %v656_v12 = vld [vmem:[%s1149_s6] sm:$0xff] }
 0x192   : > { %v485_v18 = vsel %vm441_vm3, %v483_v15, 0.0 }
 0x193   : > { %v562_v19 = vrot.slane %v561_v16, 2  ;;  %v526_v20 = vadd.f32 %v525_v17, %v524_v13  ;;  %v486_v21 = vrot.slane %v485_v18, 4  ;;  %v446_v22 = vpop.xlane.xlu1 %445  ;;  %v901_v13 = vmov 0.0  }
 0x194   : > { %v447_v23 = vsel %vm441_vm3, %v446_v22, 0.0  ;;  %730 = vmatprep.mubr.f32.mxu1 %v901_v13 }
 0x195   : > { %v563_v24 = vadd.f32 %v562_v19, %v561_v16  ;;  %v527_v25 = vrot.slane %v526_v20, 1  ;;  %v487_v26 = vadd.f32 %v486_v21, %v485_v18  ;;  %v448_v27 = vrot.slane %v447_v23, 4 }
 0x197   : > { %v564_v28 = vrot.slane %v563_v24, 1  ;;  %v528_v29 = vadd.f32 %v527_v25, %v526_v20  ;;  %v488_v30 = vrot.slane %v487_v26, 2  ;;  %v449_v31 = vadd.f32 %v448_v27, %v447_v23 }
 0x199   : > { %v489_v32 = vadd.f32 %v488_v30, %v487_v26  ;;  %v450_v33 = vrot.slane %v449_v31, 2  ;;  %v565_v34 = vadd.f32 %v564_v28, %v563_v24  ;;  %v529_v35 = vmul.f32 0.0009765625, %v528_v29 }
 0x19b   : > { %v490_v36 = vrot.slane %v489_v32, 1  ;;  %v451_v37 = vadd.f32 %v450_v33, %v449_v31  ;;  %v566_v40 = vmul.f32 0.0009765625, %v565_v34  ;;  %v1055_v41 = vsub.f32 %v1016_v50, %v529_v35 }
 0x19c   : > { %v1058_v42 = vsub.f32 %v1020_v53, %v529_v35 }
 0x19d   : > { %v491_v38 = vadd.f32 %v490_v36, %v489_v32  ;;  %v452_v39 = vrot.slane %v451_v37, 1  ;;  %v532_v47 = vmul.f32 %v1055_v41, %v1055_v41  ;;  %v1071_v49 = vsub.f32 %v1016_v50, %v566_v40 }
 0x19e   : > { %v533_v48 = vmul.f32 %v1058_v42, %v1058_v42  ;;  %v1078_v57 = vsub.f32 %v1020_v53, %v566_v40 }
 0x19f   : > { %v492_v43 = vmul.f32 0.0009765625, %v491_v38  ;;  %v453_v44 = vadd.f32 %v452_v39, %v451_v37  ;;  %v534_v61 = vsel %vm441_vm3, %v532_v47, 0.0  ;;  %v569_v50 = vmul.f32 %v1071_v49, %v1071_v49 }
 0x1a0   : > { %v535_v62 = vsel %vm441_vm3, %v533_v48, 0.0  ;;  %v570_v63 = vmul.f32 %v1078_v57, %v1078_v57 }
 0x1a1   : > { %v1061_v45 = vsub.f32 %v1022_v54, %v492_v43  ;;  %v1064_v46 = vsub.f32 %v1018_v52, %v492_v43  ;;  %v454_v51 = vmul.f32 0.0009765625, %v453_v44  ;;  %v536_v1 = vadd.f32 %v535_v62, %v534_v61 }
 0x1a2   : > { %v571_v2 = vsel %vm476_vm2, %v569_v50, 0.0  ;;  %v572_v3 = vsel %vm476_vm2, %v570_v63, 0.0 }
 0x1a3   : > { %v495_v55 = vmul.f32 %v1061_v45, %v1061_v45  ;;  %v496_v56 = vmul.f32 %v1064_v46, %v1064_v46  ;;  %v1089_v0 = vsub.f32 %v1022_v54, %v454_v51  ;;  %v1092_v53 = vsub.f32 %v1018_v52, %v454_v51 }
 0x1a4   : > { %v573_v6 = vadd.f32 %v572_v3, %v571_v2 }
 0x1a5   : > { %v497_v58 = vsel %vm476_vm2, %v495_v55, 0.0  ;;  %v498_v59 = vsel %vm476_vm2, %v496_v56, 0.0  ;;  %v457_v4 = vmul.f32 %v1089_v0, %v1089_v0  ;;  %v458_v5 = vmul.f32 %v1092_v53, %v1092_v53 }
 0x1a6   : > { %v499_v60 = vadd.f32 %v498_v59, %v497_v58 }
 0x1a7   : > { %v459_v54 = vsel %vm441_vm3, %v457_v4, 0.0  ;;  %v460_v7 = vsel %vm441_vm3, %v458_v5, 0.0 }
 0x1a8   : > { %500 = vadd.xlane.f32.xlu1 %v499_v60  ;;  %v461_v52 = vadd.f32 %v460_v7, %v459_v54 }
 0x1ac   : > { %537 = vadd.xlane.f32.xlu1 %v536_v1 }
 0x1b0   : > { %574 = vadd.xlane.f32.xlu1 %v573_v6 }
 0x1b4   : > { %462 = vadd.xlane.f32.xlu1 %v461_v52 }
 0x1c5   : > { %604 = vperm.xlu1 %867, %v596_v8  }
 0x1c9   : > { %620 = vperm.xlu1 %867, %v612_v9  }
 0x1cd   : > { %615 = vperm.xlu1 %867, %v611_v10  }
 0x1d1   : > { %338 = vperm.xlu1 %867, %v325_v11  }
 0x1d5   : > { %659 = vperm.xlu1 %867, %v656_v12  }
 0x231   : > { %v501_v14 = vpop.xlane.xlu1 %500 }
 0x232   : > { %v503_v15 = vrot.slane %v501_v14, 4 }
 0x234   : > { %v505_v16 = vsel %vm441_vm3, %v503_v15, 0.0 }
 0x235   : > { %v506_v17 = vrot.slane %v505_v16, 4  ;;  %v538_v18 = vpop.xlane.xlu1 %537 }
 0x236   : > { %v539_v19 = vsel %vm441_vm3, %v538_v18, 0.0 }
 0x237   : > { %v507_v20 = vadd.f32 %v506_v17, %v505_v16  ;;  %v540_v21 = vrot.slane %v539_v19, 4  ;;  %v600_v16 = vpop.permute.xlu0 %599 }
 0x239   : > { %v508_v22 = vrot.slane %v507_v20, 2  ;;  %v541_v23 = vadd.f32 %v540_v21, %v539_v19  ;;  %v575_v24 = vpop.xlane.xlu1 %574 }
 0x23a   : > { %v577_v25 = vrot.slane %v575_v24, 4 }
 0x23b   : > { %v509_v26 = vadd.f32 %v508_v22, %v507_v20  ;;  %v542_v27 = vrot.slane %v541_v23, 2 }
 0x23c   : > { %v579_v28 = vsel %vm441_vm3, %v577_v25, 0.0 }
 0x23d   : > { %v510_v29 = vrot.slane %v509_v26, 1  ;;  %v543_v30 = vadd.f32 %v542_v27, %v541_v23  ;;  %v580_v31 = vrot.slane %v579_v28, 4  ;;  %v463_v32 = vpop.xlane.xlu1 %462 }
 0x23e   : > { %v464_v33 = vsel %vm441_vm3, %v463_v32, 0.0 }
 0x23f   : > { %v544_v34 = vrot.slane %v543_v30, 1  ;;  %v581_v35 = vadd.f32 %v580_v31, %v579_v28  ;;  %v465_v36 = vrot.slane %v464_v33, 4  ;;  %v511_v37 = vadd.f32 %v510_v29, %v509_v26 }
 0x241   : > { %v545_v38 = vadd.f32 %v544_v34, %v543_v30  ;;  %v582_v39 = vrot.slane %v581_v35, 2  ;;  %v466_v40 = vadd.f32 %v465_v36, %v464_v33  ;;  %v512_v48 = vmul.f32 0.0009765625, %v511_v37  ;;  %v605_v2 = vpop.permute.xlu1 %604 }
 0x243   : > { %v546_v43 = vmul.f32 0.0009765625, %v545_v38  ;;  %v583_v44 = vadd.f32 %v582_v39, %v581_v35  ;;  %v467_v47 = vrot.slane %v466_v40, 2  ;;  %v513_v60 = vadd.f32 1e-05, %v512_v48 }
 0x245   : > { %v584_v51 = vrot.slane %v583_v44, 1  ;;  %v468_v55 = vadd.f32 %v467_v47, %v466_v40  ;;  %v547_v56 = vadd.f32 1e-05, %v546_v43  ;;  %v621_v8 = vpop.permute.xlu1 %620  ;;  %v655_v40 = vld [vmem:[%s1148_s5] sm:$0xff] }
 0x247   : > { %v585_v58 = vadd.f32 %v584_v51, %v583_v44  ;;  %v469_v59 = vrot.slane %v468_v55, 1  ;;  %868 = vrsqrt.f32 %v547_v56  ;;  %v436_v44 = vpop.f32.mrf.mxu1 }
 0x248   : > { %870 = vrsqrt.f32 %v513_v60 }
 0x249   : > { %v586_v61 = vmul.f32 0.0009765625, %v585_v58  ;;  %v470_v50 = vadd.f32 %v469_v59, %v468_v55  ;;  %v438_v47 = vpop.f32.mrf.mxu1 }
 0x24b   : > { %v587_v62 = vadd.f32 1e-05, %v586_v61  ;;  %v471_v63 = vmul.f32 0.0009765625, %v470_v50 }
 0x24d   : > { %872 = vrsqrt.f32 %v587_v62  ;;  %v472_v1 = vadd.f32 1e-05, %v471_v63 }
 0x24f   : > { %874 = vrsqrt.f32 %v472_v1 }
 0x254   : > { %v869_v3 = vpop.eup %868 }
 0x255   : > { %v871_v4 = vpop.eup %870  ;;  %v549_v6 = vmul.f32 %v869_v3, %v1055_v41  ;;  %v550_v54 = vmul.f32 %v869_v3, %v1058_v42 }
 0x256   : > { %v515_v10 = vmul.f32 %v871_v4, %v1061_v45  ;;  %v516_v11 = vmul.f32 %v871_v4, %v1064_v46  ;;  %v616_v46 = vpop.permute.xlu1 %615 }
 0x25a   : > { %v873_v5 = vpop.eup %872  ;;  %v339_v43 = vpop.permute.xlu1 %338 }
 0x25b   : > { %v589_v7 = vmul.f32 %v873_v5, %v1071_v49  ;;  %v590_v52 = vmul.f32 %v873_v5, %v1078_v57  ;;  %v437_v55 = vadd.f32 %v436_v44, %v339_v43  ;;  %v439_v59 = vadd.f32 %v438_v47, %v339_v43 }
 0x25c   : > { %v875_v9 = vpop.eup %874 }
 0x25d   : > { %v593_v12 = vsel %vm441_vm3, %v549_v6, %v589_v7  ;;  %v594_v13 = vsel %vm441_vm3, %v550_v54, %v590_v52  ;;  %v474_v14 = vmul.f32 %v875_v9, %v1089_v0  ;;  %v475_v41 = vmul.f32 %v875_v9, %v1092_v53 }
 0x25e   : > { %v609_v15 = vmul.f32 %v605_v2, %v593_v12  ;;  %v610_v42 = vmul.f32 %v605_v2, %v594_v13  ;;  %v660_v48 = vpop.permute.xlu1 %659 }
 0x25f   : > { %v591_v49 = vsel %vm441_vm3, %v474_v14, %v515_v10  ;;  %v592_v57 = vsel %vm441_vm3, %v475_v41, %v516_v11 }
 0x260   : > { %v625_v17 = vadd.f32 %v621_v8, %v609_v15  ;;  %v626_v18 = vadd.f32 %v621_v8, %v610_v42  ;;  %v607_v45 = vmul.f32 %v600_v16, %v591_v49  ;;  %v608_v19 = vmul.f32 %v600_v16, %v592_v57 }
 0x262   : > { %v811_v20 = vmul.f32 -1.442695, %v625_v17  ;;  %v812_v21 = vmul.f32 -1.442695, %v626_v18  ;;  %v623_v22 = vadd.f32 %v616_v46, %v607_v45  ;;  %v624_v23 = vadd.f32 %v616_v46, %v608_v19 }
 0x264   : > { %876 = vpow2.f32 %v811_v20  ;;  %v809_v0 = vmul.f32 -1.442695, %v623_v22  ;;  %v810_v24 = vmul.f32 -1.442695, %v624_v23 }
 0x265   : > { %878 = vpow2.f32 %v812_v21 }
 0x266   : > { %880 = vpow2.f32 %v809_v0 }
 0x267   : > { %882 = vpow2.f32 %v810_v24 }
 0x271   : > { %v877_v53 = vpop.eup %876 }
 0x272   : > { %v879_v25 = vpop.eup %878  ;;  %v641_v26 = vadd.f32 1.0, %v877_v53 }
 0x273   : > { %v881_v27 = vpop.eup %880  ;;  %v642_v28 = vadd.f32 1.0, %v879_v25 }
 0x274   : > { %v883_v29 = vpop.eup %882  ;;  %884 = vrcp.f32 %v641_v26  ;;  %v639_v30 = vadd.f32 1.0, %v881_v27 }
 0x275   : > { %886 = vrcp.f32 %v642_v28  ;;  %v640_v31 = vadd.f32 1.0, %v883_v29 }
 0x276   : > { %888 = vrcp.f32 %v639_v30 }
 0x277   : > { %890 = vrcp.f32 %v640_v31 }
 0x281   : > { %v885_v32 = vpop.eup %884 }
 0x282   : > { %v887_v33 = vpop.eup %886  ;;  %v653_v34 = vmul.f32 %v885_v32, %v625_v17 }
 0x283   : > { %v889_v35 = vpop.eup %888  ;;  %v654_v36 = vmul.f32 %v887_v33, %v626_v18 }
 0x284   : > { %v891_v37 = vpop.eup %890  ;;  %v651_v38 = vmul.f32 %v889_v35, %v623_v22 }
 0x285   : > { %v652_v39 = vmul.f32 %v891_v37, %v624_v23  ;;  %694 = vmatprep.subr.mxu1 %v654_v36 }
 0x286   : > { %695 = vmatpush1.msra.mxu1 %v653_v34 }
 0x287   : > { %696 = vmatprep.subr.mxu1 %v652_v39 }
 0x288   : > { %697 = vmatpush1.msra.mxu1 %v651_v38 }
 0x289   : > { %813 = vmatmul.mubr.msk.f32.vlgmr.msra.gmra.mxu1 %vm662_vm4, %v655_v40 }
 0x349   : > { %v732_v51 = vpop.f32.mrf.mxu1 }
 0x34a   : > { %v733_v56 = vadd.f32 %v732_v51, %v660_v48 }
 0x34b   : > { %v734_v58 = vpop.f32.mrf.mxu1 }
 0x34c   : > { %v737_v60 = vadd.f32 %v733_v56, %v437_v55  ;;  %v735_v61 = vadd.f32 %v734_v58, %v660_v48 }
 0x34e   : > { %739 = vst [vmem:[%s278_s19] sm:$0xff] %v737_v60  ;;  %v738_v50 = vadd.f32 %v735_v61, %v439_v59 }
 0x350   : > { %740 = vst [vmem:[%s278_s19 + $0x8] sm:$0xff] %v738_v50 }
 0x351 PF: > { %s17_s24 = sadd.s32 1, %s898_s24  }
 0x352   : > { %p14_p4 = scmp.ge.s32.totalorder %s17_s24, 4  }
 0x354   :  { %16 = sbr.rel (!%p14_p4) target bundleno = 1 (0x1), region = 78 }

// kernel: encoder_forward.5
= control target key start
LH: loop header
LB: loop body
LE: loop exit
PB: predicated region body
PF: predicated region fallthrough
CT: control target
= control target key end

     0   :  { %s889_s24 = smov 0   ;;  %s1100_s0 = inlined_call_operand.vmem [shape: f32[2,200,256], index: 0, kind: input, shape index: {}]   ;;  %s1101_s1 = inlined_call_operand.vmem [shape: f32[16,200], index: 1, kind: input, shape index: {}]   ;;  %s1102_s2 = inlined_call_operand.vmem [shape: f32[16,1], index: 2, kind: input, shape index: {}]   ;;  %s1103_s3 = inlined_call_operand.vmem [shape: f32[16,1], index: 3, kind: input, shape index: {}]   ;;  %s1104_s4 = inlined_call_operand.vmem [shape: f32[16,1], index: 4, kind: input, shape index: {}]   ;;  %s1105_s5 = inlined_call_operand.vmem [shape: f32[8,16], index: 5, kind: input, shape index: {}]   ;;  %s1106_s6 = inlined_call_operand.vmem [shape: f32[8,1], index: 6, kind: input, shape index: {}]   ;;  %s1107_s7 = inlined_call_operand.vmem [shape: f32[2,8,256], index: 7, kind: output, shape index: {}]  }
   0x1 LB: > { %s784_s25 = sadd.s32 4294967295, %s845_s24   ;;  %p788_p0 = scmp.ge.s32.totalorder %s845_s24, 1  ;;  %s845_s24 = sphi %s889_s24, %s17_s24  }
   0x2   : > { %p237_p1 = scmp.lt.s32.totalorder %s845_s24, 3 }
   0x4   : > { %p238_p2 = pnand %p788_p0, %p237_p1 }
   0x5   : > { %p269_p3 = scmp.lt.s32.totalorder (!%p238_p2), %s784_s25, 1 }
   0x6   : > { %241 = sbr.rel (%p238_p2) target bundleno = 861 (0x35d), region = 48 }
   0xb   : > { %v330_v0 = vld [vmem:[%s1101_s1 + $0x8] sm:$0xff]  ;;  %vm345_vm0 = vcmask 588800   ;;  %v847_v1 = vmov 0   ;;  %s1109_s25 = smov (!%p269_p3, %s784_s25), 1  ;;  %v333_v3 = vld [vmem:[%s1102_s2] sm:$0xff]  ;;  %v332_v55 = vld [vmem:[%s1101_s1 + $0x18] sm:$0xff] }
   0xc   : > { %792 = vmatprep.mubr.msk.f32.mxu0 %vm345_vm0, %v330_v0  ;;  %813 = vset.pattern.permute.xlu0 %v847_v1  ;;  %v334_v2 = vld [vmem:[%s1102_s2 + $0x8] sm:$0xff]  ;;  %s802_s9 = smul.u32 400, %s1109_s25  ;;  %v329_v54 = vld [vmem:[%s1101_s1] sm:$0xff]  ;;  %v331_v56 = vld [vmem:[%s1101_s1 + $0x10] sm:$0xff]  ;;  %vm464_vm1 = vcmask 1047556   ;;  %vm429_vm2 = vcmask 1043456  }
   0xd   : > { %342 = vperm.xlu0 %813, %v334_v2   ;;  %814 = vset.pattern.permute.xlu1 %v847_v1  ;;  %vm650_vm3 = vcmask 130048   ;;  %s801_s10 = sshll.u32 %s1109_s25, 4 }
   0xe   : > { %s913_s12 = scalar_lea.vmem %s1100_s0, %s802_s9  ;;  %s278_s13 = scalar_lea.vmem %s1107_s7, %s801_s10 }
   0xf   : > { %v310_v4 = vld [vmem:[%s913_s12 + $0xf8] sm:$0xff]  ;;  %v309_v5 = vld [vmem:[%s913_s12 + $0xf0] sm:$0xff]  ;;  %v308_v6 = vld [vmem:[%s913_s12 + $0xe8] sm:$0xff] }
  0x10   : > { %352 = vmatprep.subr.mxu0 %v310_v4  ;;  %v307_v7 = vld [vmem:[%s913_s12 + $0xe0] sm:$0xff]  ;;  %v306_v8 = vld [vmem:[%s913_s12 + $0xd8] sm:$0xff]  ;;  %v305_v9 = vld [vmem:[%s913_s12 + $0xd0] sm:$0xff] }
  0x11   : > { %337 = vperm.xlu0 %813, %v333_v3   ;;  %353 = vmatpush1.msra.mxu0 %v309_v5  ;;  %v922_v10 = vld [vmem:[%s913_s12 + $0xc8] sm:$0xff]  ;;  %v925_v11 = vld [vmem:[%s913_s12 + $0xc0] sm:$0xff]  ;;  %v302_v12 = vld [vmem:[%s913_s12 + $0xb8] sm:$0xff] }
  0x12   : > { %354 = vmatprep.subr.mxu0 %v308_v6  ;;  %v301_v13 = vld [vmem:[%s913_s12 + $0xb0] sm:$0xff]  ;;  %v300_v14 = vld [vmem:[%s913_s12 + $0xa8] sm:$0xff]  ;;  %v299_v15 = vld [vmem:[%s913_s12 + $0xa0] sm:$0xff] }
  0x13   : > { %355 = vmatpush1.msra.mxu0 %v307_v7  ;;  %v298_v16 = vld [vmem:[%s913_s12 + $0x98] sm:$0xff]  ;;  %v297_v17 = vld [vmem:[%s913_s12 + $0x90] sm:$0xff]  ;;  %v296_v18 = vld [vmem:[%s913_s12 + $0x88] sm:$0xff] }
  0x14   : > { %356 = vmatprep.subr.mxu0 %v306_v8  ;;  %v295_v19 = vld [vmem:[%s913_s12 + $0x80] sm:$0xff]  ;;  %v294_v20 = vld [vmem:[%s913_s12 + $0x78] sm:$0xff]  ;;  %v293_v21 = vld [vmem:[%s913_s12 + $0x70] sm:$0xff] }
  0x15   : > { %357 = vmatpush1.msra.mxu0 %v305_v9  ;;  %v292_v22 = vld [vmem:[%s913_s12 + $0x68] sm:$0xff]  ;;  %v291_v23 = vld [vmem:[%s913_s12 + $0x60] sm:$0xff]  ;;  %v290_v24 = vld [vmem:[%s913_s12 + $0x58] sm:$0xff] }
  0x16   : > { %358 = vmatprep.subr.mxu0 %v922_v10  ;;  %v289_v25 = vld [vmem:[%s913_s12 + $0x50] sm:$0xff]  ;;  %v288_v26 = vld [vmem:[%s913_s12 + $0x48] sm:$0xff]  ;;  %v287_v27 = vld [vmem:[%s913_s12 + $0x40] sm:$0xff] }
  0x17   : > { %359 = vmatpush1.msra.mxu0 %v925_v11  ;;  %v286_v28 = vld [vmem:[%s913_s12 + $0x38] sm:$0xff]  ;;  %v285_v29 = vld [vmem:[%s913_s12 + $0x30] sm:$0xff]  ;;  %v284_v30 = vld [vmem:[%s913_s12 + $0x28] sm:$0xff] }
  0x18   : > { %360 = vmatprep.subr.mxu0 %v302_v12  ;;  %v283_v31 = vld [vmem:[%s913_s12 + $0x20] sm:$0xff]  ;;  %v282_v32 = vld [vmem:[%s913_s12 + $0x18] sm:$0xff]  ;;  %v281_v33 = vld [vmem:[%s913_s12 + $0x10] sm:$0xff] }
  0x19   : > { %361 = vmatpush1.msra.mxu0 %v301_v13  ;;  %v280_v34 = vld [vmem:[%s913_s12 + $0x8] sm:$0xff]  ;;  %v279_v35 = vld [vmem:[%s913_s12] sm:$0xff]  ;;  %v326_v38 = vld [vmem:[%s913_s12 + $0x178] sm:$0xff] }
  0x1a   : > { %362 = vmatprep.subr.mxu0 %v300_v14  ;;  %v328_v36 = vld [vmem:[%s913_s12 + $0x188] sm:$0xff]  ;;  %v327_v37 = vld [vmem:[%s913_s12 + $0x180] sm:$0xff]  ;;  %v325_v39 = vld [vmem:[%s913_s12 + $0x170] sm:$0xff] }
  0x1b   : > { %363 = vmatpush1.msra.mxu0 %v299_v15  ;;  %v324_v40 = vld [vmem:[%s913_s12 + $0x168] sm:$0xff]  ;;  %v323_v41 = vld [vmem:[%s913_s12 + $0x160] sm:$0xff]  ;;  %v322_v42 = vld [vmem:[%s913_s12 + $0x158] sm:$0xff] }
  0x1c   : > { %364 = vmatprep.subr.mxu0 %v298_v16  ;;  %v321_v43 = vld [vmem:[%s913_s12 + $0x150] sm:$0xff]  ;;  %v320_v44 = vld [vmem:[%s913_s12 + $0x148] sm:$0xff]  ;;  %v319_v45 = vld [vmem:[%s913_s12 + $0x140] sm:$0xff] }
  0x1d   : > { %365 = vmatpush1.msra.mxu0 %v297_v17  ;;  %v318_v46 = vld [vmem:[%s913_s12 + $0x138] sm:$0xff]  ;;  %v317_v47 = vld [vmem:[%s913_s12 + $0x130] sm:$0xff]  ;;  %v316_v48 = vld [vmem:[%s913_s12 + $0x128] sm:$0xff] }
  0x1e   : > { %366 = vmatprep.subr.mxu0 %v296_v18  ;;  %v315_v49 = vld [vmem:[%s913_s12 + $0x120] sm:$0xff]  ;;  %v314_v50 = vld [vmem:[%s913_s12 + $0x118] sm:$0xff]  ;;  %v313_v51 = vld [vmem:[%s913_s12 + $0x110] sm:$0xff] }
  0x1f   : > { %367 = vmatpush1.msra.mxu0 %v295_v19  ;;  %v312_v52 = vld [vmem:[%s913_s12 + $0x108] sm:$0xff]  ;;  %v311_v53 = vld [vmem:[%s913_s12 + $0x100] sm:$0xff] }
  0x20   : > { %368 = vmatprep.subr.mxu0 %v294_v20  ;;  %v583_v17 = vld [vmem:[%s1103_s3] sm:$0xff] }
  0x21   : > { %369 = vmatpush1.msra.mxu0 %v293_v21 }
  0x22   : > { %370 = vmatprep.subr.mxu0 %v292_v22 }
  0x23   : > { %371 = vmatpush1.msra.mxu0 %v291_v23 }
  0x24   : > { %372 = vmatprep.subr.mxu0 %v290_v24 }
  0x25   : > { %373 = vmatpush1.msra.mxu0 %v289_v25 }
  0x26   : > { %374 = vmatprep.subr.mxu0 %v288_v26 }
  0x27   : > { %375 = vmatpush1.msra.mxu0 %v287_v27 }
  0x28   : > { %376 = vmatprep.subr.mxu0 %v286_v28 }
  0x29   : > { %377 = vmatpush1.msra.mxu0 %v285_v29 }
  0x2a   : > { %378 = vmatprep.subr.mxu0 %v284_v30 }
  0x2b   : > { %379 = vmatpush1.msra.mxu0 %v283_v31 }
  0x2c   : > { %380 = vmatprep.subr.mxu0 %v282_v32 }
  0x2d   : > { %381 = vmatpush1.msra.mxu0 %v281_v33 }
  0x2e   : > { %382 = vmatprep.subr.mxu0 %v280_v34 }
  0x2f   : > { %383 = vmatpush1.msra.mxu0 %v279_v35 }
  0x30   : > { %398 = vmatprep.subr.mxu0 %v328_v36 }
  0x31   : > { %399 = vmatpush2.msra.mxu0 %v327_v37 }
  0x32   : > { %400 = vmatprep.subr.mxu0 %v326_v38 }
  0x33   : > { %401 = vmatpush2.msra.mxu0 %v325_v39 }
  0x34   : > { %402 = vmatprep.subr.mxu0 %v324_v40 }
  0x35   : > { %403 = vmatpush2.msra.mxu0 %v323_v41 }
  0x36   : > { %404 = vmatprep.subr.mxu0 %v322_v42 }
  0x37   : > { %405 = vmatpush2.msra.mxu0 %v321_v43 }
  0x38   : > { %406 = vmatprep.subr.mxu0 %v320_v44 }
  0x39   : > { %407 = vmatpush2.msra.mxu0 %v319_v45 }
  0x3a   : > { %408 = vmatprep.subr.mxu0 %v318_v46 }
  0x3b   : > { %409 = vmatpush2.msra.mxu0 %v317_v47 }
  0x3c   : > { %410 = vmatprep.subr.mxu0 %v316_v48 }
  0x3d   : > { %411 = vmatpush2.msra.mxu0 %v315_v49 }
  0x3e   : > { %412 = vmatprep.subr.mxu0 %v314_v50 }
  0x3f   : > { %413 = vmatpush2.msra.mxu0 %v313_v51 }
  0x40   : > { %414 = vmatprep.subr.mxu0 %v312_v52 }
  0x41   : > { %415 = vmatpush2.msra.mxu0 %v311_v53 }
  0x42   : > { %417 = vmatmul.mubr.f32.vlgmr.msra.gmra.mxu0 %v329_v54 }
  0x43   : > { %793 = vmatprep.mubr.msk.f32.mxu0 %vm345_vm0, %v332_v55 }
  0x46   : > { %423 = vmatmul.mubr.f32.gmra.mxu0 %v331_v56 }
  0x88   : > { %v343_v57 = vpop.permute.xlu0 %342 }
  0x8c   : > { %v338_v61 = vpop.permute.xlu0 %337 }
 0x102   : > { %v418_v58 = vpop.f32.mrf.mxu0 }
 0x103   : > { %v987_v2 = vadd.f32 %v418_v58, %v338_v61 }
 0x104   : > { %v420_v59 = vpop.f32.mrf.mxu0 }
 0x105   : > { %v983_v0 = vadd.f32 %v420_v59, %v338_v61  ;;  %v465_v12 = vsel %vm464_vm1, %v987_v2, 0.0  ;;  %v430_v15 = vsel %vm429_vm2, %v987_v2, 0.0 }
 0x106   : > { %v424_v60 = vpop.f32.mrf.mxu0 }
 0x107   : > { %v981_v62 = vadd.f32 %v424_v60, %v343_v57  ;;  %v466_v9 = vsel %vm464_vm1, %v983_v0, 0.0  ;;  %v431_v14 = vsel %vm429_vm2, %v983_v0, 0.0 }
 0x108   : > { %v426_v63 = vpop.f32.mrf.mxu0  ;;  %v467_v13 = vadd.f32 %v466_v9, %v465_v12  ;;  %v432_v16 = vadd.f32 %v431_v14, %v430_v15 }
 0x109   : > { %v985_v1 = vadd.f32 %v426_v63, %v343_v57  ;;  %v539_v3 = vsel %vm464_vm1, %v981_v62, 0.0  ;;  %v505_v5 = vsel %vm429_vm2, %v981_v62, 0.0 }
 0x10b   : > { %v540_v4 = vsel %vm464_vm1, %v985_v1, 0.0  ;;  %v506_v6 = vsel %vm429_vm2, %v985_v1, 0.0 }
 0x10c   : > { %v541_v7 = vadd.f32 %v540_v4, %v539_v3  ;;  %v507_v8 = vadd.f32 %v506_v6, %v505_v5 }
 0x10e   : > { %542 = vadd.xlane.f32.xlu1 %v541_v7  ;;  %508 = vadd.xlane.f32.xlu0 %v507_v8 }
 0x112   : > { %468 = vadd.xlane.f32.xlu1 %v467_v13 }
 0x116   : > { %433 = vadd.xlane.f32.xlu1 %v432_v16 }
 0x124   : > { %587 = vperm.xlu0 %813, %v583_v17  }
 0x197   : > { %v543_v18 = vpop.xlane.xlu1 %542  ;;  %v509_v19 = vpop.xlane.xlu0 %508 }
 0x198   : > { %v545_v20 = vrot.slane %v543_v18, 4  ;;  %v510_v21 = vsel %vm429_vm2, %v509_v19, 0.0 }
 0x199   : > { %v511_v22 = vrot.slane %v510_v21, 4 }
 0x19a   : > { %v547_v23 = vsel %vm429_vm2, %v545_v20, 0.0 }
 0x19b   : > { %v548_v24 = vrot.slane %v547_v23, 4  ;;  %v512_v25 = vadd.f32 %v511_v22, %v510_v21  ;;  %v469_v26 = vpop.xlane.xlu1 %468  ;;  %v584_v22 = vld [vmem:[%s1103_s3 + $0x8] sm:$0xff] }
 0x19c   : > { %v471_v27 = vrot.slane %v469_v26, 4  ;;  %v848_v26 = vmov 0.0  }
 0x19d   : > { %v549_v28 = vadd.f32 %v548_v24, %v547_v23  ;;  %v513_v29 = vrot.slane %v512_v25, 2  ;;  %v600_v23 = vld [vmem:[%s1104_s4 + $0x8] sm:$0xff]  ;;  %v599_v24 = vld [vmem:[%s1104_s4] sm:$0xff]  ;;  %718 = vmatprep.mubr.f32.mxu1 %v848_v26 }
 0x19e   : > { %v473_v30 = vsel %vm429_vm2, %v471_v27, 0.0 }
 0x19f   : > { %v550_v31 = vrot.slane %v549_v28, 2  ;;  %v514_v32 = vadd.f32 %v513_v29, %v512_v25  ;;  %v474_v33 = vrot.slane %v473_v30, 4  ;;  %v434_v34 = vpop.xlane.xlu1 %433  ;;  %v644_v25 = vld [vmem:[%s1106_s6] sm:$0xff] }
 0x1a0   : > { %v435_v35 = vsel %vm429_vm2, %v434_v34, 0.0 }
 0x1a1   : > { %v551_v36 = vadd.f32 %v550_v31, %v549_v28  ;;  %v515_v37 = vrot.slane %v514_v32, 1  ;;  %v475_v38 = vadd.f32 %v474_v33, %v473_v30  ;;  %v436_v39 = vrot.slane %v435_v35, 4 }
 0x1a3   : > { %v552_v40 = vrot.slane %v551_v36, 1  ;;  %v516_v41 = vadd.f32 %v515_v37, %v514_v32  ;;  %v476_v42 = vrot.slane %v475_v38, 2  ;;  %v437_v43 = vadd.f32 %v436_v39, %v435_v35 }
 0x1a5   : > { %v477_v44 = vadd.f32 %v476_v42, %v475_v38  ;;  %v438_v45 = vrot.slane %v437_v43, 2  ;;  %v553_v46 = vadd.f32 %v552_v40, %v551_v36  ;;  %v517_v47 = vmul.f32 0.0009765625, %v516_v41 }
 0x1a7   : > { %v478_v48 = vrot.slane %v477_v44, 1  ;;  %v439_v49 = vadd.f32 %v438_v45, %v437_v43  ;;  %v554_v52 = vmul.f32 0.0009765625, %v553_v46  ;;  %v1013_v53 = vsub.f32 %v981_v62, %v517_v47 }
 0x1a8   : > { %v1016_v54 = vsub.f32 %v985_v1, %v517_v47 }
 0x1a9   : > { %v479_v50 = vadd.f32 %v478_v48, %v477_v44  ;;  %v440_v51 = vrot.slane %v439_v49, 1  ;;  %v520_v59 = vmul.f32 %v1013_v53, %v1013_v53  ;;  %v1029_v61 = vsub.f32 %v981_v62, %v554_v52 }
 0x1aa   : > { %v521_v60 = vmul.f32 %v1016_v54, %v1016_v54  ;;  %v1036_v5 = vsub.f32 %v985_v1, %v554_v52 }
 0x1ab   : > { %v480_v55 = vmul.f32 0.0009765625, %v479_v50  ;;  %v441_v56 = vadd.f32 %v440_v51, %v439_v49  ;;  %v522_v9 = vsel %vm429_vm2, %v520_v59, 0.0  ;;  %v557_v62 = vmul.f32 %v1029_v61, %v1029_v61 }
 0x1ac   : > { %v523_v12 = vsel %vm429_vm2, %v521_v60, 0.0  ;;  %v558_v13 = vmul.f32 %v1036_v5, %v1036_v5 }
 0x1ad   : > { %v1019_v57 = vsub.f32 %v987_v2, %v480_v55  ;;  %v1022_v58 = vsub.f32 %v983_v0, %v480_v55  ;;  %v442_v63 = vmul.f32 0.0009765625, %v441_v56  ;;  %v524_v15 = vadd.f32 %v523_v12, %v522_v9 }
 0x1ae   : > { %v559_v16 = vsel %vm464_vm1, %v557_v62, 0.0  ;;  %v560_v17 = vsel %vm464_vm1, %v558_v13, 0.0 }
 0x1af   : > { %v483_v3 = vmul.f32 %v1019_v57, %v1019_v57  ;;  %v484_v4 = vmul.f32 %v1022_v58, %v1022_v58  ;;  %v1047_v14 = vsub.f32 %v987_v2, %v442_v63  ;;  %v1050_v1 = vsub.f32 %v983_v0, %v442_v63 }
 0x1b0   : > { %v561_v20 = vadd.f32 %v560_v17, %v559_v16 }
 0x1b1   : > { %v485_v6 = vsel %vm464_vm1, %v483_v3, 0.0  ;;  %v486_v7 = vsel %vm464_vm1, %v484_v4, 0.0  ;;  %v445_v18 = vmul.f32 %v1047_v14, %v1047_v14  ;;  %v446_v19 = vmul.f32 %v1050_v1, %v1050_v1 }
 0x1b2   : > { %v487_v8 = vadd.f32 %v486_v7, %v485_v6 }
 0x1b3   : > { %v447_v2 = vsel %vm429_vm2, %v445_v18, 0.0  ;;  %v448_v21 = vsel %vm429_vm2, %v446_v19, 0.0 }
 0x1b4   : > { %488 = vadd.xlane.f32.xlu1 %v487_v8  ;;  %v449_v0 = vadd.f32 %v448_v21, %v447_v2 }
 0x1b8   : > { %525 = vadd.xlane.f32.xlu1 %v524_v15 }
 0x1bc   : > { %562 = vadd.xlane.f32.xlu1 %v561_v20 }
 0x1c0   : > { %450 = vadd.xlane.f32.xlu1 %v449_v0 }
 0x1d1   : > { %592 = vperm.xlu1 %814, %v584_v22  }
 0x1d5   : > { %608 = vperm.xlu1 %814, %v600_v23  }
 0x1d9   : > { %603 = vperm.xlu1 %814, %v599_v24  }
 0x1dd   : > { %647 = vperm.xlu1 %814, %v644_v25  }
 0x23d   : > { %v489_v27 = vpop.xlane.xlu1 %488 }
 0x23e   : > { %v491_v28 = vrot.slane %v489_v27, 4 }
 0x240   : > { %v493_v29 = vsel %vm429_vm2, %v491_v28, 0.0 }
 0x241   : > { %v494_v30 = vrot.slane %v493_v29, 4  ;;  %v526_v31 = vpop.xlane.xlu1 %525 }
 0x242   : > { %v527_v32 = vsel %vm429_vm2, %v526_v31, 0.0  ;;  %v588_v31 = vpop.permute.xlu0 %587 }
 0x243   : > { %v495_v33 = vadd.f32 %v494_v30, %v493_v29  ;;  %v528_v34 = vrot.slane %v527_v32, 4 }
 0x245   : > { %v496_v35 = vrot.slane %v495_v33, 2  ;;  %v529_v36 = vadd.f32 %v528_v34, %v527_v32  ;;  %v563_v37 = vpop.xlane.xlu1 %562 }
 0x246   : > { %v565_v38 = vrot.slane %v563_v37, 4 }
 0x247   : > { %v497_v39 = vadd.f32 %v496_v35, %v495_v33  ;;  %v530_v40 = vrot.slane %v529_v36, 2 }
 0x248   : > { %v567_v41 = vsel %vm429_vm2, %v565_v38, 0.0 }
 0x249   : > { %v498_v42 = vrot.slane %v497_v39, 1  ;;  %v531_v43 = vadd.f32 %v530_v40, %v529_v36  ;;  %v568_v44 = vrot.slane %v567_v41, 4  ;;  %v451_v45 = vpop.xlane.xlu1 %450 }
 0x24a   : > { %v452_v46 = vsel %vm429_vm2, %v451_v45, 0.0 }
 0x24b   : > { %v532_v47 = vrot.slane %v531_v43, 1  ;;  %v569_v48 = vadd.f32 %v568_v44, %v567_v41  ;;  %v453_v49 = vrot.slane %v452_v46, 4  ;;  %v499_v50 = vadd.f32 %v498_v42, %v497_v39 }
 0x24d   : > { %v533_v51 = vadd.f32 %v532_v47, %v531_v43  ;;  %v570_v52 = vrot.slane %v569_v48, 2  ;;  %v454_v55 = vadd.f32 %v453_v49, %v452_v46  ;;  %v500_v63 = vmul.f32 0.0009765625, %v499_v50  ;;  %v593_v17 = vpop.permute.xlu1 %592 }
 0x24f   : > { %v534_v56 = vmul.f32 0.0009765625, %v533_v51  ;;  %v571_v59 = vadd.f32 %v570_v52, %v569_v48  ;;  %v455_v60 = vrot.slane %v454_v55, 2  ;;  %v501_v9 = vadd.f32 1e-05, %v500_v63 }
 0x251   : > { %v572_v3 = vrot.slane %v571_v59, 1  ;;  %v456_v4 = vadd.f32 %v455_v60, %v454_v55  ;;  %v535_v6 = vadd.f32 1e-05, %v534_v56  ;;  %v609_v23 = vpop.permute.xlu1 %608 }
 0x253   : > { %v573_v7 = vadd.f32 %v572_v3, %v571_v59  ;;  %v457_v8 = vrot.slane %v456_v4, 1  ;;  %815 = vrsqrt.f32 %v535_v6  ;;  %v643_v59 = vld [vmem:[%s1105_s5] sm:$0xff] }
 0x254   : > { %817 = vrsqrt.f32 %v501_v9 }
 0x255   : > { %v574_v62 = vmul.f32 0.0009765625, %v573_v7  ;;  %v458_v12 = vadd.f32 %v457_v8, %v456_v4 }
 0x257   : > { %v575_v13 = vadd.f32 1e-05, %v574_v62  ;;  %v459_v15 = vmul.f32 0.0009765625, %v458_v12 }
 0x259   : > { %819 = vrsqrt.f32 %v575_v13  ;;  %v460_v16 = vadd.f32 1e-05, %v459_v15 }
 0x25b   : > { %821 = vrsqrt.f32 %v460_v16 }
 0x260   : > { %v816_v18 = vpop.eup %815 }
 0x261   : > { %v818_v19 = vpop.eup %817  ;;  %v537_v2 = vmul.f32 %v816_v18, %v1013_v53  ;;  %v538_v21 = vmul.f32 %v816_v18, %v1016_v54 }
 0x262   : > { %v503_v25 = vmul.f32 %v818_v19, %v1019_v57  ;;  %v504_v26 = vmul.f32 %v818_v19, %v1022_v58  ;;  %v604_v58 = vpop.permute.xlu1 %603 }
 0x266   : > { %v820_v20 = vpop.eup %819  ;;  %v648_v60 = vpop.permute.xlu1 %647 }
 0x267   : > { %v577_v0 = vmul.f32 %v820_v20, %v1029_v61  ;;  %v578_v22 = vmul.f32 %v820_v20, %v1036_v5 }
 0x268   : > { %v822_v24 = vpop.eup %821 }
 0x269   : > { %v581_v27 = vsel %vm429_vm2, %v537_v2, %v577_v0  ;;  %v582_v28 = vsel %vm429_vm2, %v538_v21, %v578_v22  ;;  %v462_v29 = vmul.f32 %v822_v24, %v1047_v14  ;;  %v463_v53 = vmul.f32 %v822_v24, %v1050_v1 }
 0x26a   : > { %v597_v30 = vmul.f32 %v593_v17, %v581_v27  ;;  %v598_v54 = vmul.f32 %v593_v17, %v582_v28 }
 0x26b   : > { %v579_v61 = vsel %vm429_vm2, %v462_v29, %v503_v25  ;;  %v580_v5 = vsel %vm429_vm2, %v463_v53, %v504_v26 }
 0x26c   : > { %v613_v32 = vadd.f32 %v609_v23, %v597_v30  ;;  %v614_v33 = vadd.f32 %v609_v23, %v598_v54  ;;  %v595_v57 = vmul.f32 %v588_v31, %v579_v61  ;;  %v596_v34 = vmul.f32 %v588_v31, %v580_v5 }
 0x26e   : > { %v796_v35 = vmul.f32 -1.442695, %v613_v32  ;;  %v797_v36 = vmul.f32 -1.442695, %v614_v33  ;;  %v611_v37 = vadd.f32 %v604_v58, %v595_v57  ;;  %v612_v38 = vadd.f32 %v604_v58, %v596_v34 }
 0x270   : > { %823 = vpow2.f32 %v796_v35  ;;  %v794_v14 = vmul.f32 -1.442695, %v611_v37  ;;  %v795_v39 = vmul.f32 -1.442695, %v612_v38 }
 0x271   : > { %825 = vpow2.f32 %v797_v36 }
 0x272   : > { %827 = vpow2.f32 %v794_v14 }
 0x273   : > { %829 = vpow2.f32 %v795_v39 }
 0x27d   : > { %v824_v1 = vpop.eup %823 }
 0x27e   : > { %v826_v40 = vpop.eup %825  ;;  %v629_v41 = vadd.f32 1.0, %v824_v1 }
 0x27f   : > { %v828_v42 = vpop.eup %827  ;;  %v630_v43 = vadd.f32 1.0, %v826_v40 }
 0x280   : > { %v830_v44 = vpop.eup %829  ;;  %831 = vrcp.f32 %v629_v41  ;;  %v627_v45 = vadd.f32 1.0, %v828_v42 }
 0x281   : > { %833 = vrcp.f32 %v630_v43  ;;  %v628_v46 = vadd.f32 1.0, %v830_v44 }
 0x282   : > { %835 = vrcp.f32 %v627_v45 }
 0x283   : > { %837 = vrcp.f32 %v628_v46 }
 0x28d   : > { %v832_v47 = vpop.eup %831 }
 0x28e   : > { %v834_v48 = vpop.eup %833  ;;  %v641_v49 = vmul.f32 %v832_v47, %v613_v32 }
 0x28f   : > { %v836_v50 = vpop.eup %835  ;;  %v642_v51 = vmul.f32 %v834_v48, %v614_v33 }
 0x290   : > { %v838_v52 = vpop.eup %837  ;;  %v639_v55 = vmul.f32 %v836_v50, %v611_v37 }
 0x291   : > { %v640_v56 = vmul.f32 %v838_v52, %v612_v38  ;;  %682 = vmatprep.subr.mxu1 %v642_v51 }
 0x292   : > { %683 = vmatpush1.msra.mxu1 %v641_v49 }
 0x293   : > { %684 = vmatprep.subr.mxu1 %v640_v56 }
 0x294   : > { %685 = vmatpush1.msra.mxu1 %v639_v55 }
 0x295   : > { %798 = vmatmul.mubr.msk.f32.vlgmr.msra.gmra.mxu1 %vm650_vm3, %v643_v59 }
 0x355   : > { %v720_v63 = vpop.f32.mrf.mxu1 }
 0x356   : > { %v721_v3 = vadd.f32 %v720_v63, %v648_v60 }
 0x357   : > { %v722_v4 = vpop.f32.mrf.mxu1 }
 0x358   : > { %v725_v6 = vadd.f32 %v721_v3, %v925_v11  ;;  %v723_v7 = vadd.f32 %v722_v4, %v648_v60 }
 0x35a   : > { %727 = vst [vmem:[%s278_s13] sm:$0xff] %v725_v6  ;;  %v726_v8 = vadd.f32 %v723_v7, %v922_v10 }
 0x35c   : > { %728 = vst [vmem:[%s278_s13 + $0x8] sm:$0xff] %v726_v8 }
 0x35d PF: > { %s17_s24 = sadd.s32 1, %s845_s24  }
 0x35e   : > { %p14_p4 = scmp.ge.s32.totalorder %s17_s24, 4  }
 0x360   :  { %16 = sbr.rel (!%p14_p4) target bundleno = 1 (0x1), region = 78 }

</bundles_post_ra>
